<compile_context>
chip_gen: v7x
topology: tpu7x:2x2x1
jax: 0.10.0
libtpu: 0.0.40
codegen_flags: <defaults>
</compile_context>

<pallas_src>
import jax
import jax.numpy as jnp
from jax.experimental import pallas as pl
from jax.experimental.pallas import tpu as pltpu


def _build_cat_pattern():
    """Symbolically replay the torch.cat chain as a list of 'x'/'y' segments."""
    x = ["x"]
    y = ["y"]
    x1 = x + y
    x2 = x + x1
    x3 = x1 + x2
    x4 = x + x3
    x5 = x1 + x4
    x6 = x2 + x5
    x7 = x3 + x6
    x8 = x4 + x7
    return tuple(x8)  # 22 segments: 14 'x', 8 'y'


_PATTERN = _build_cat_pattern()

_TARGET_OUT_BLOCK_BYTES = 2 * 1024 * 1024  # ~2 MiB of output per grid step


def _round_up(v, m):
    return -(-v // m) * m


def _round_down(v, m):
    return (v // m) * m


def _phys_vmem_bytes():
    """Physical VMEM of the current generation; conservative fallback (v7x)."""
    try:
        return int(pltpu.get_tpu_info().vmem_capacity_bytes)
    except Exception:
        return 64 * 1024 * 1024


def _vmem_budget_bytes():
    """Budget for the double-buffered pipeline working set (with headroom)."""
    return min(int(_phys_vmem_bytes() * 0.4), 48 * 1024 * 1024)


def _choose_tile_l(L, out_bytes_per_lane, set_bytes_per_lane, vmem_budget_bytes):
    """Lane-tile selection: multiple of 128, sized by bytes (not lane count).

    - aims for ~_TARGET_OUT_BLOCK_BYTES of output per grid step,
    - caps so the double-buffered (x + y + out) blocks fit the VMEM budget,
    - keeps >= 2 grid steps when possible (v7x 2-TC sharding + pipelining),
    - never requires L % tl == 0 (caller uses pl.cdiv for a ragged last block).
    """
    if L <= 128:
        return L  # block == full lane extent is always legal
    L128 = _round_up(L, 128)

    # Byte-based target for the output block.
    tl = _round_up(max(1, _TARGET_OUT_BLOCK_BYTES // max(out_bytes_per_lane, 1)), 128)

    # VMEM cap: double-buffered input+output blocks within the budget.
    cap = _round_down(vmem_budget_bytes // (2 * max(set_bytes_per_lane, 1)), 128)
    tl = min(tl, cap) if cap >= 128 else 128

    # Keep at least 2 grid steps so "parallel" can shard across two TCs.
    tl = min(tl, max(128, _round_down(L128 // 2, 128)))

    return min(tl, L128)


def _make_cat_relu_kernel(pattern):
    def kernel(x_ref, y_ref, o_ref):
        # relu computed exactly once per (x, y) tile (dtype-safe zero so bf16
        # inputs are not upcast).
        rx = jnp.maximum(x_ref[...], jnp.array(0, dtype=x_ref.dtype))
        ry = jnp.maximum(y_ref[...], jnp.array(0, dtype=y_ref.dtype))
        # Assemble the 22-segment replication once along the channel axis and
        # write it with a single dense, lane-aligned store.
        pieces = [rx if tok == "x" else ry for tok in pattern]
        o_ref[...] = jnp.concatenate(pieces, axis=1)

    return kernel


def cat_relu(x, y):
    assert x.ndim == 3 and y.ndim == 3
    B, NX, L = x.shape
    By, NY, Ly = y.shape
    assert B == By and L == Ly, "cat along dim=1 requires matching dims 0 and 2"
    assert x.dtype == y.dtype

    n_x_segs = sum(1 for t in _PATTERN if t == "x")   # 14
    n_y_segs = len(_PATTERN) - n_x_segs               # 8
    c_out = n_x_segs * NX + n_y_segs * NY

    itemsize = jnp.dtype(x.dtype).itemsize
    out_bytes_per_lane = B * c_out * itemsize
    set_bytes_per_lane = B * (NX + NY + c_out) * itemsize

    budget = _vmem_budget_bytes()
    tl = _choose_tile_l(L, out_bytes_per_lane, set_bytes_per_lane, budget)
    grid = (pl.cdiv(L, tl),)

    # Explicit VMEM limit: covers the double-buffered pipeline set with
    # headroom, clamped to a generation-safe range.
    pipeline_bytes = 2 * set_bytes_per_lane * tl
    vmem_limit = int(1.5 * pipeline_bytes) + (4 << 20)
    vmem_limit = max(vmem_limit, 16 * 1024 * 1024)
    vmem_limit = min(vmem_limit, _phys_vmem_bytes() * 3 // 4)

    kernel = _make_cat_relu_kernel(_PATTERN)

    return pl.pallas_call(
        kernel,
        out_shape=jax.ShapeDtypeStruct((B, c_out, L), x.dtype),
        grid=grid,
        in_specs=[
            pl.BlockSpec((B, NX, tl), lambda l: (0, 0, l)),
            pl.BlockSpec((B, NY, tl), lambda l: (0, 0, l)),
        ],
        out_specs=pl.BlockSpec((B, c_out, tl), lambda l: (0, 0, l)),
        compiler_params=pltpu.CompilerParams(
            dimension_semantics=("parallel",),
            vmem_limit_bytes=vmem_limit,
        ),
    )(x, y)


def cat_relu_reference(x, y):
    """Pure-JAX replay of the PyTorch forward (for verification)."""
    x1 = jnp.concatenate((x, y), axis=1)
    x2 = jnp.concatenate((x, x1), axis=1)
    x3 = jnp.concatenate((x1, x2), axis=1)
    x4 = jnp.concatenate((x, x3), axis=1)
    x5 = jnp.concatenate((x1, x4), axis=1)
    x6 = jnp.concatenate((x2, x5), axis=1)
    x7 = jnp.concatenate((x3, x6), axis=1)
    x8 = jnp.concatenate((x4, x7), axis=1)
    return jnp.maximum(x8.reshape(x8.shape), 0)


if __name__ == "__main__":
    # NOTE: the original file's example inputs ((2,3,4) and (2,3,2)) are
    # inconsistent for a dim=1 cat (dim-2 mismatch).  We keep the same channel
    # counts (3 and 2) and use an L that exercises the tiled/pipelined path,
    # including a ragged final block (640 is not a multiple of the chosen 256
    # lane tile -> grid of 3 with a partial last step).
    key = jax.random.PRNGKey(0)
    kx, ky = jax.random.split(key)
    x = jax.random.normal(kx, (2, 3, 640), dtype=jnp.float32)
    y = jax.random.normal(ky, (2, 2, 640), dtype=jnp.float32)

    out = jax.block_until_ready(cat_relu(x, y))

    ref = cat_relu_reference(x, y)
    assert out.shape == ref.shape, (out.shape, ref.shape)
    assert jnp.allclose(out, ref), "mismatch vs reference"

    print("KERNEL_OK")
</pallas_src>

<mosaic_0001>
module attributes {stable_mosaic.version = 11 : i64} {
  func.func @kernel(%arg0: i32, %arg1: memref<2x3x256xf32, #tpu.memory_space<vmem>>, %arg2: memref<2x2x256xf32, #tpu.memory_space<vmem>>, %arg3: memref<2x58x256xf32, #tpu.memory_space<vmem>>) attributes {dimension_semantics = [#tpu.dimension_semantics<parallel>], iteration_bounds = array<i64: 3>, scalar_prefetch = 0 : i64, scratch_operands = 0 : i64, tpu.core_type = #tpu.core_type<tc>, window_params = [{transform_indices = @transform_0, window_bounds = array<i64: 2, 3, 256>}, {transform_indices = @transform_1, window_bounds = array<i64: 2, 2, 256>}, {transform_indices = @transform_2, window_bounds = array<i64: 2, 58, 256>}]} {
    %c0 = arith.constant 0 : index
    %c0_0 = arith.constant 0 : index
    %c0_1 = arith.constant 0 : index
    %0 = vector.load %arg1[%c0, %c0_0, %c0_1] : memref<2x3x256xf32, #tpu.memory_space<vmem>>, vector<2x3x256xf32>
    %cst = arith.constant 0.000000e+00 : f32
    %1 = vector.broadcast %cst : f32 to vector<2x3x256xf32>
    %2 = arith.maximumf %0, %1 : vector<2x3x256xf32>
    %c0_2 = arith.constant 0 : index
    %c0_3 = arith.constant 0 : index
    %c0_4 = arith.constant 0 : index
    %3 = vector.load %arg2[%c0_2, %c0_3, %c0_4] : memref<2x2x256xf32, #tpu.memory_space<vmem>>, vector<2x2x256xf32>
    %cst_5 = arith.constant 0.000000e+00 : f32
    %4 = vector.broadcast %cst_5 : f32 to vector<2x2x256xf32>
    %5 = arith.maximumf %3, %4 : vector<2x2x256xf32>
    %6 = tpu.concatenate %2, %2, %5, %2, %2, %5, %2, %5, %2, %2, %5, %2, %2, %5, %2, %5 in 1 : vector<2x3x256xf32>, vector<2x3x256xf32>, vector<2x2x256xf32>, vector<2x3x256xf32>, vector<2x3x256xf32>, vector<2x2x256xf32>, vector<2x3x256xf32>, vector<2x2x256xf32>, vector<2x3x256xf32>, vector<2x3x256xf32>, vector<2x2x256xf32>, vector<2x3x256xf32>, vector<2x3x256xf32>, vector<2x2x256xf32>, vector<2x3x256xf32>, vector<2x2x256xf32> -> vector<2x42x256xf32>
    %7 = tpu.concatenate %2, %2, %5, %2, %2, %5 in 1 : vector<2x3x256xf32>, vector<2x3x256xf32>, vector<2x2x256xf32>, vector<2x3x256xf32>, vector<2x3x256xf32>, vector<2x2x256xf32> -> vector<2x16x256xf32>
    %8 = tpu.concatenate %6, %7 in 1 : vector<2x42x256xf32>, vector<2x16x256xf32> -> vector<2x58x256xf32>
    %c0_6 = arith.constant 0 : index
    %c0_7 = arith.constant 0 : index
    %c0_8 = arith.constant 0 : index
    %9 = vector.load %arg3[%c0_6, %c0_7, %c0_8] : memref<2x58x256xf32, #tpu.memory_space<vmem>>, vector<2x58x256xf32>
    tpu.vector_store %arg3[%c0_6, %c0_7, %c0_8], %8 {strides = array<i32>} : memref<2x58x256xf32, #tpu.memory_space<vmem>>, vector<2x58x256xf32>,
    return
  }
  func.func @transform_0(%arg0: i32) -> (i32, i32, i32) {
    %c0_i32 = arith.constant 0 : i32
    %c0_i32_0 = arith.constant 0 : i32
    %c0_i32_1 = arith.constant 0 : i32
    return %c0_i32, %c0_i32_0, %arg0 : i32, i32, i32
  }
  func.func @transform_1(%arg0: i32) -> (i32, i32, i32) {
    %c0_i32 = arith.constant 0 : i32
    %c0_i32_0 = arith.constant 0 : i32
    %c0_i32_1 = arith.constant 0 : i32
    return %c0_i32, %c0_i32_0, %arg0 : i32, i32, i32
  }
  func.func @transform_2(%arg0: i32) -> (i32, i32, i32) {
    %c0_i32 = arith.constant 0 : i32
    %c0_i32_0 = arith.constant 0 : i32
    %c0_i32_1 = arith.constant 0 : i32
    return %c0_i32, %c0_i32_0, %arg0 : i32, i32, i32
  }
}

</mosaic_0001>

<bundles_post_ra>
// kernel: tpu_custom_call.1
= control target key start
LH: loop header
LB: loop body
LE: loop exit
PB: predicated region body
PF: predicated region fallthrough
CT: control target
= control target key end

     0   :  { %s2972_s9 = smov 0   ;;  %s2974_s10 = smov 0   ;;  %s4442_s0 = inlined_call_operand.vmem [shape: f32[2,3,640], index: 0, kind: input, shape index: {}]   ;;  %s4443_s1 = inlined_call_operand.vmem [shape: f32[2,2,640], index: 1, kind: input, shape index: {}]   ;;  %s4444_s2 = inlined_call_operand.vmem [shape: f32[2,58,640], index: 2, kind: output, shape index: {}]  }
   0x1   :  { %s2976_s11 = smov 0  }
   0x2 LB: > { %s2988_s12 = sadd.s32 4294967295, %s2756_s11   ;;  %s2991_s13 = sadd.s32 1, %s2756_s11   ;;  %s2756_s11 = sphi %s2976_s11, %s4487_s11   ;;  %s2752_s10 = sphi %s2974_s10, %s4486_s10   ;;  %s2748_s9 = sphi %s2972_s9, %s4485_s9  }
   0x3   : > { %s16_s14 = ssub.s32 %s2756_s11, %s2991_s13  ;;  %s19_s15 = sadd.s32 1, %s2752_s10 }
   0x4   : > { %p17_p0 = scmp.eq.s32.totalorder %s16_s14, 0  ;;  %p26_p1 = scmp.ne.s32.totalorder %s2752_s10, %s2748_s9 }
   0x5   : > { %p27_p2 = scmp.eq.s32.totalorder %s2756_s11, 0  ;;  %p82_p3 = scmp.eq.s32.totalorder %s2988_s12, 2 }
   0x6   : > { %s3001_s16 = scalar_select %p17_p0, %s2752_s10, %s19_s15  }
   0x7   : > { %p3003_p4 = por %p27_p2, %p26_p1  ;;  %p3007_p5 = por %p82_p3, %p26_p1 }
   0x8   : > { %p2024_p6 = scmp.ge.s32.totalorder %s2756_s11, 3 }
   0xa   : > { %104 = sbr.rel (%p2024_p6) target bundleno = 332 (0x14c), region = 16 }
  0x11   : > { %107 = sbr.rel (!%p3003_p4) target bundleno = 159 (0x9f), region = 20  ;;  %s109_s19 = sand.u32 (%p3003_p4), 1, %s2752_s10  }
  0x12   : > { %s2026_s20 = sshll.u32 (%p3003_p4), %s2756_s11, 1  ;;  %s2025_s21 = sshll.u32 (%p3003_p4), %s109_s19, 4 }
  0x13   : > { %s113_s22 = ssub.s32 (%p3003_p4), 5, %s2026_s20  ;;  %s2112_s23 = sshll.u32 (%p3003_p4), %s2756_s11, 3 }
  0x14   : > { %p114_p7 = scmp.lt.s32.totalorder (%p3003_p4), %s113_s22, 2  ;;  %s3020_s26 = scalar_lea.vmem (%p3003_p4), %s4442_s0, %s2112_s23  }
  0x15   : > { %s3024_s29 = scalar_lea.vmem (%p3003_p4), [#allocation2], %s2025_s21  }
  0x18   : > { %s4489_s22 = smov (!%p114_p7, %s113_s22), 2 }
  0x19   : > { %s2027_s27 = sshll.u32 %s4489_s22, 7  ;;  %s3022_s28 = sshll.u32 %s4489_s22, 2 }
  0x1a   : > { %p2031_p8 = scmp.eq.s32.totalorder %s2027_s27, 0 }
  0x1b   : > { %p124_p9 = scmp.lt.u32.totalorder (!%p2031_p8), %s3022_s28, 8 }
  0x1c   : > { %123 = sbr.rel (%p2031_p8) target bundleno = 159 (0x9f), region = 24 }
  0x23   : > { %127 = sbr.rel (%p124_p9) target bundleno = 150 (0x96), region = 28  ;;  %s3028_s30 = sand.u32 (!%p124_p9), 7, %s3022_s28  }
  0x24   : > { %p145_p10 = scmp.eq.s32.totalorder (!%p124_p9), %s3028_s30, 0  ;;  %p2032_p11 = scmp.ne.s32.totalorder (!%p124_p9), %s3028_s30, 0 }
  0x2a   : > { %148 = sbr.rel (%p2032_p11) target bundleno = 94 (0x5e), region = 43  ;;  %s149_s3 = sshrl.u32 (!%p2032_p11), %s3022_s28, 3 }
  0x2b   : > { %s3035_s4 = sshrl.u32 (!%p2032_p11), %s149_s3, 5 }
  0x2c   : > { %p2033_p12 = scmp.le.s32.totalorder (!%p2032_p11), %s3035_s4, 0 }
  0x31   : > { %1832 = sbr.rel (%p2033_p12) target bundleno = 74 (0x4a), region = 317  ;;  %s4447_s5 = smov (!%p2033_p12), %s3024_s29 }
  0x32   : > { %s4448_s6 = smov (!%p2033_p12), %s3020_s26  ;;  %s3044_s7 = smov (!%p2033_p12), 0  }
  0x33   : > { %s3046_s8 = smov (!%p2033_p12), 0  }
  0x38 LB: >> { %v162_v0 = vld [vmem:[%s2764_s6] sm:$0xff]  ;;  %v226_v1 = vld [vmem:[%s2764_s6 + $0x14] sm:$0xff]  ;;  %v232_v4 = vld [vmem:[%s2764_s6 + $0x2c] sm:$0xff]  ;;  %s290_s14 = sadd.s32 1, %s2768_s7  ;;  %s156_s8 = sadd.s32 1, %s2772_s8   ;;  %s2772_s8 = sphi %s3046_s8, %s156_s8   ;;  %s2768_s7 = sphi %s3044_s7, %s4451_s7   ;;  %s2764_s6 = sphi %s4448_s6, %s4450_s6   ;;  %s2760_s5 = sphi %s4447_s5, %s4449_s5  }
  0x39   : >> { %v228_v2 = vld [vmem:[%s2764_s6 + $0x1c] sm:$0xff]  ;;  %163 = vst [vmem:[%s2760_s5] sm:$0xff] %v162_v0  ;;  %227 = vst [vmem:[%s2760_s5 + $0x8] sm:$0xff] %v226_v1  ;;  %v230_v3 = vld [vmem:[%s2764_s6 + $0x24] sm:$0xff]  ;;  %p291_p13 = scmp.ge.s32.totalorder %s290_s14, %s3035_s4  ;;  %p155_p0 = scmp.ge.s32.totalorder %s156_s8, %s3035_s4 }
  0x3a   : >> { %229 = vst [vmem:[%s2760_s5 + $0x10] sm:$0xff] %v228_v2  ;;  %v234_v5 = vld [vmem:[%s2764_s6 + $0x34] sm:$0xff]  ;;  %231 = vst [vmem:[%s2760_s5 + $0x18] sm:$0xff] %v230_v3  ;;  %v236_v6 = vld [vmem:[%s2764_s6 + $0x3c] sm:$0xff] }
  0x3b   : >> { %233 = vst [vmem:[%s2760_s5 + $0x20] sm:$0xff] %v232_v4  ;;  %235 = vst [vmem:[%s2760_s5 + $0x28] sm:$0xff] %v234_v5  ;;  %v238_v7 = vld [vmem:[%s2764_s6 + $0x44] sm:$0xff]  ;;  %v240_v8 = vld [vmem:[%s2764_s6 + $0x4c] sm:$0xff]  ;;  %s4491_s14 = smov (%p291_p13, %s290_s14), 0 }
  0x3c   : >> { %237 = vst [vmem:[%s2760_s5 + $0x30] sm:$0xff] %v236_v6  ;;  %239 = vst [vmem:[%s2760_s5 + $0x38] sm:$0xff] %v238_v7  ;;  %v242_v9 = vld [vmem:[%s2764_s6 + $0x54] sm:$0xff]  ;;  %v244_v10 = vld [vmem:[%s2764_s6 + $0x5c] sm:$0xff]  ;;  %s2034_s15 = sshll.u32 %s4491_s14, 8  ;;  %s4451_s7 = smov %s4491_s14 }
  0x3d   : >> { %241 = vst [vmem:[%s2760_s5 + $0x40] sm:$0xff] %v240_v8  ;;  %v246_v11 = vld [vmem:[%s2764_s6 + $0x64] sm:$0xff]  ;;  %243 = vst [vmem:[%s2760_s5 + $0x48] sm:$0xff] %v242_v9  ;;  %v248_v12 = vld [vmem:[%s2764_s6 + $0x6c] sm:$0xff]  ;;  %s295_s19 = scalar_lea.vmem %s3020_s26, %s2034_s15   ;;  %s296_s20 = scalar_lea.vmem %s3024_s29, %s2034_s15 [#allocation2]  }
  0x3e   : >> { %245 = vst [vmem:[%s2760_s5 + $0x50] sm:$0xff] %v244_v10  ;;  %247 = vst [vmem:[%s2760_s5 + $0x58] sm:$0xff] %v246_v11  ;;  %v250_v13 = vld [vmem:[%s2764_s6 + $0x74] sm:$0xff]  ;;  %v252_v14 = vld [vmem:[%s2764_s6 + $0x7c] sm:$0xff] }
  0x3f   : >> { %249 = vst [vmem:[%s2760_s5 + $0x60] sm:$0xff] %v248_v12  ;;  %251 = vst [vmem:[%s2760_s5 + $0x68] sm:$0xff] %v250_v13  ;;  %v254_v15 = vld [vmem:[%s2764_s6 + $0x84] sm:$0xff]  ;;  %v256_v16 = vld [vmem:[%s2764_s6 + $0x8c] sm:$0xff] }
  0x40   : >> { %253 = vst [vmem:[%s2760_s5 + $0x70] sm:$0xff] %v252_v14  ;;  %v258_v17 = vld [vmem:[%s2764_s6 + $0x94] sm:$0xff]  ;;  %255 = vst [vmem:[%s2760_s5 + $0x78] sm:$0xff] %v254_v15  ;;  %v260_v18 = vld [vmem:[%s2764_s6 + $0x9c] sm:$0xff] }
  0x41   : >> { %257 = vst [vmem:[%s2760_s5 + $0x80] sm:$0xff] %v256_v16  ;;  %259 = vst [vmem:[%s2760_s5 + $0x88] sm:$0xff] %v258_v17  ;;  %v262_v19 = vld [vmem:[%s2764_s6 + $0xa4] sm:$0xff]  ;;  %v264_v20 = vld [vmem:[%s2764_s6 + $0xac] sm:$0xff] }
  0x42   : >> { %261 = vst [vmem:[%s2760_s5 + $0x90] sm:$0xff] %v260_v18  ;;  %263 = vst [vmem:[%s2760_s5 + $0x98] sm:$0xff] %v262_v19  ;;  %v266_v21 = vld [vmem:[%s2764_s6 + $0xb4] sm:$0xff]  ;;  %v268_v22 = vld [vmem:[%s2764_s6 + $0xbc] sm:$0xff] }
  0x43   : >> { %265 = vst [vmem:[%s2760_s5 + $0xa0] sm:$0xff] %v264_v20  ;;  %v270_v23 = vld [vmem:[%s2764_s6 + $0xc4] sm:$0xff]  ;;  %267 = vst [vmem:[%s2760_s5 + $0xa8] sm:$0xff] %v266_v21  ;;  %v272_v24 = vld [vmem:[%s2764_s6 + $0xcc] sm:$0xff]  ;;  %158 = sbr.rel (!%p155_p0) target bundleno = 56 (0x38), region = 323 }
  0x44   : >> { %269 = vst [vmem:[%s2760_s5 + $0xb0] sm:$0xff] %v268_v22  ;;  %271 = vst [vmem:[%s2760_s5 + $0xb8] sm:$0xff] %v270_v23  ;;  %v274_v25 = vld [vmem:[%s2764_s6 + $0xd4] sm:$0xff]  ;;  %v276_v26 = vld [vmem:[%s2764_s6 + $0xdc] sm:$0xff] }
  0x45   : >> { %273 = vst [vmem:[%s2760_s5 + $0xc0] sm:$0xff] %v272_v24  ;;  %275 = vst [vmem:[%s2760_s5 + $0xc8] sm:$0xff] %v274_v25  ;;  %v278_v27 = vld [vmem:[%s2764_s6 + $0xe4] sm:$0xff]  ;;  %v280_v28 = vld [vmem:[%s2764_s6 + $0xec] sm:$0xff] }
  0x46   : >> { %277 = vst [vmem:[%s2760_s5 + $0xd0] sm:$0xff] %v276_v26  ;;  %v282_v29 = vld [vmem:[%s2764_s6 + $0xf4] sm:$0xff]  ;;  %279 = vst [vmem:[%s2760_s5 + $0xd8] sm:$0xff] %v278_v27  ;;  %v284_v30 = vld [vmem:[%s2764_s6 + $0xfc] sm:$0xff] }
  0x47   : >> { %281 = vst [vmem:[%s2760_s5 + $0xe0] sm:$0xff] %v280_v28  ;;  %283 = vst [vmem:[%s2760_s5 + $0xe8] sm:$0xff] %v282_v29  ;;  %v286_v31 = vld [vmem:[%s2764_s6 + $0x104] sm:$0xff]  ;;  %v288_v32 = vld [vmem:[%s2764_s6 + $0x10c] sm:$0xff]  ;;  %s4450_s6 = smov %s295_s19 }
  0x48   : >> { %285 = vst [vmem:[%s2760_s5 + $0xf0] sm:$0xff] %v284_v30  ;;  %287 = vst [vmem:[%s2760_s5 + $0xf8] sm:$0xff] %v286_v31 }
  0x49   : >> { %289 = vst [vmem:[%s2760_s5 + $0x100] sm:$0xff] %v288_v32  ;;  %s4449_s5 = smov %s296_s20 }
  0x4a PF: > { %s3146_s21 = sand.u32 31, %s149_s3   ;;  %s2113_s22 = sshll.u32 %s3035_s4, 12 }
  0x4b   : > { %s301_s23 = sshra.s32 %s2113_s22, 4  ;;  %p2039_p1 = scmp.le.s32.totalorder %s3146_s21, 0 }
  0x4c   : > { %s3150_s24 = scalar_lea.vmem %s3020_s26, %s301_s23   ;;  %s305_s25 = scalar_lea.vmem %s3024_s29, %s301_s23 [#allocation2]  }
  0x4d   : > { %1846 = sbr.rel (%p2039_p1) target bundleno = 94 (0x5e), region = 328  ;;  %s2774_s27 = smov (!%p2039_p1), %s305_s25  }
  0x4e   : > { %s2778_s8 = smov (!%p2039_p1), %s3150_s24   ;;  %s2782_s14 = smov (!%p2039_p1), 0  }
  0x4f   : > { %s2786_s5 = smov (!%p2039_p1), 0  }
  0x54 LB: >> { %v317_v33 = vld [vmem:[%s2780_s8] sm:$0xff]  ;;  %v319_v34 = vld [vmem:[%s2780_s8 + $0x14] sm:$0xff]  ;;  %s321_s3 = sadd.s32 1, %s2784_s14  ;;  %s311_s5 = sadd.s32 1, %s2788_s5   ;;  %s2788_s5 = sphi %s2786_s5, %s311_s5   ;;  %s2784_s14 = sphi %s2782_s14, %s2783_s14   ;;  %s2780_s8 = sphi %s2778_s8, %s326_s8   ;;  %s2776_s27 = sphi %s2774_s27, %s327_s27  }
  0x55   : >> { %318 = vst [vmem:[%s2776_s27] sm:$0xff] %v317_v33  ;;  %320 = vst [vmem:[%s2776_s27 + $0x8] sm:$0xff] %v319_v34  ;;  %p322_p2 = scmp.ge.s32.totalorder %s321_s3, %s3146_s21  ;;  %p310_p3 = scmp.ge.s32.totalorder %s311_s5, %s3146_s21 }
  0x57   : >> { %s4493_s3 = smov (%p322_p2, %s321_s3), 0  ;;  %313 = sbr.rel (!%p310_p3) target bundleno = 84 (0x54), region = 334 }
  0x58   : >> { %s2040_s4 = sshll.u32 %s4493_s3, 3  ;;  %s2783_s14 = smov %s4493_s3  }
  0x59   : >> { %s326_s8 = scalar_lea.vmem %s3150_s24, %s2040_s4   ;;  %s327_s27 = scalar_lea.vmem %s305_s25, %s2040_s4 [#allocation2]  }
  0x5e PF: > { %330 = sbr.rel (%p145_p10) target bundleno = 150 (0x96), region = 61  ;;  %s332_s6 = ssub.s32 (!%p145_p10), %s3022_s28, %s3028_s30 }
  0x5f   : > { %s336_s7 = sshrl.u32 (!%p145_p10), %s3022_s28, 3  ;;  %s3164_s15 = scalar_lea.vmem (!%p145_p10), %s3020_s26, %s332_s6 }
  0x60   : > { %s3167_s19 = scalar_lea.vmem (!%p145_p10), %s3024_s29, %s332_s6 [#allocation2]  ;;  %s3171_s20 = sshrl.u32 (!%p145_p10), %s336_s7, 5 }
  0x61   : > { %p2042_p6 = scmp.le.s32.totalorder (!%p145_p10), %s3171_s20, 0 }
  0x65   : > { %1860 = sbr.rel (%p2042_p6) target bundleno = 126 (0x7e), region = 339  ;;  %s4452_s21 = smov (!%p2042_p6), %s3024_s29 }
  0x66   : > { %s4453_s22 = smov (!%p2042_p6), %s3020_s26  ;;  %s3180_s23 = smov (!%p2042_p6), 0  }
  0x67   : > { %s3182_s24 = smov (!%p2042_p6), 0  }
  0x6c LB: >> { %v349_v35 = vld [vmem:[%s2796_s22] sm:$0xff]  ;;  %v413_v36 = vld [vmem:[%s2796_s22 + $0x14] sm:$0xff]  ;;  %v419_v39 = vld [vmem:[%s2796_s22 + $0x2c] sm:$0xff]  ;;  %s477_s25 = sadd.s32 1, %s2800_s23  ;;  %s343_s24 = sadd.s32 1, %s2804_s24   ;;  %s2804_s24 = sphi %s3182_s24, %s343_s24   ;;  %s2800_s23 = sphi %s3180_s23, %s4456_s23   ;;  %s2796_s22 = sphi %s4453_s22, %s4455_s22   ;;  %s2792_s21 = sphi %s4452_s21, %s4454_s21  }
  0x6d   : >> { %v415_v37 = vld [vmem:[%s2796_s22 + $0x1c] sm:$0xff]  ;;  %350 = vst [vmem:[%s2792_s21] sm:$0xff] %v349_v35  ;;  %414 = vst [vmem:[%s2792_s21 + $0x8] sm:$0xff] %v413_v36  ;;  %v417_v38 = vld [vmem:[%s2796_s22 + $0x24] sm:$0xff]  ;;  %p478_p7 = scmp.ge.s32.totalorder %s477_s25, %s3171_s20  ;;  %p342_p8 = scmp.ge.s32.totalorder %s343_s24, %s3171_s20 }
  0x6e   : >> { %416 = vst [vmem:[%s2792_s21 + $0x10] sm:$0xff] %v415_v37  ;;  %v421_v40 = vld [vmem:[%s2796_s22 + $0x34] sm:$0xff]  ;;  %418 = vst [vmem:[%s2792_s21 + $0x18] sm:$0xff] %v417_v38  ;;  %v423_v41 = vld [vmem:[%s2796_s22 + $0x3c] sm:$0xff] }
  0x6f   : >> { %420 = vst [vmem:[%s2792_s21 + $0x20] sm:$0xff] %v419_v39  ;;  %422 = vst [vmem:[%s2792_s21 + $0x28] sm:$0xff] %v421_v40  ;;  %v425_v42 = vld [vmem:[%s2796_s22 + $0x44] sm:$0xff]  ;;  %v427_v43 = vld [vmem:[%s2796_s22 + $0x4c] sm:$0xff]  ;;  %s4495_s25 = smov (%p478_p7, %s477_s25), 0 }
  0x70   : >> { %424 = vst [vmem:[%s2792_s21 + $0x30] sm:$0xff] %v423_v41  ;;  %426 = vst [vmem:[%s2792_s21 + $0x38] sm:$0xff] %v425_v42  ;;  %v429_v44 = vld [vmem:[%s2796_s22 + $0x54] sm:$0xff]  ;;  %v431_v45 = vld [vmem:[%s2796_s22 + $0x5c] sm:$0xff]  ;;  %s2043_s27 = sshll.u32 %s4495_s25, 8  ;;  %s4456_s23 = smov %s4495_s25 }
  0x71   : >> { %428 = vst [vmem:[%s2792_s21 + $0x40] sm:$0xff] %v427_v43  ;;  %v433_v46 = vld [vmem:[%s2796_s22 + $0x64] sm:$0xff]  ;;  %430 = vst [vmem:[%s2792_s21 + $0x48] sm:$0xff] %v429_v44  ;;  %v435_v47 = vld [vmem:[%s2796_s22 + $0x6c] sm:$0xff]  ;;  %s482_s8 = scalar_lea.vmem %s3020_s26, %s2043_s27   ;;  %s483_s14 = scalar_lea.vmem %s3024_s29, %s2043_s27 [#allocation2]  }
  0x72   : >> { %432 = vst [vmem:[%s2792_s21 + $0x50] sm:$0xff] %v431_v45  ;;  %434 = vst [vmem:[%s2792_s21 + $0x58] sm:$0xff] %v433_v46  ;;  %v437_v48 = vld [vmem:[%s2796_s22 + $0x74] sm:$0xff]  ;;  %v439_v49 = vld [vmem:[%s2796_s22 + $0x7c] sm:$0xff] }
  0x73   : >> { %436 = vst [vmem:[%s2792_s21 + $0x60] sm:$0xff] %v435_v47  ;;  %438 = vst [vmem:[%s2792_s21 + $0x68] sm:$0xff] %v437_v48  ;;  %v441_v50 = vld [vmem:[%s2796_s22 + $0x84] sm:$0xff]  ;;  %v443_v51 = vld [vmem:[%s2796_s22 + $0x8c] sm:$0xff] }
  0x74   : >> { %440 = vst [vmem:[%s2792_s21 + $0x70] sm:$0xff] %v439_v49  ;;  %v445_v52 = vld [vmem:[%s2796_s22 + $0x94] sm:$0xff]  ;;  %442 = vst [vmem:[%s2792_s21 + $0x78] sm:$0xff] %v441_v50  ;;  %v447_v53 = vld [vmem:[%s2796_s22 + $0x9c] sm:$0xff] }
  0x75   : >> { %444 = vst [vmem:[%s2792_s21 + $0x80] sm:$0xff] %v443_v51  ;;  %446 = vst [vmem:[%s2792_s21 + $0x88] sm:$0xff] %v445_v52  ;;  %v449_v54 = vld [vmem:[%s2796_s22 + $0xa4] sm:$0xff]  ;;  %v451_v55 = vld [vmem:[%s2796_s22 + $0xac] sm:$0xff] }
  0x76   : >> { %448 = vst [vmem:[%s2792_s21 + $0x90] sm:$0xff] %v447_v53  ;;  %450 = vst [vmem:[%s2792_s21 + $0x98] sm:$0xff] %v449_v54  ;;  %v453_v56 = vld [vmem:[%s2796_s22 + $0xb4] sm:$0xff]  ;;  %v455_v57 = vld [vmem:[%s2796_s22 + $0xbc] sm:$0xff] }
  0x77   : >> { %452 = vst [vmem:[%s2792_s21 + $0xa0] sm:$0xff] %v451_v55  ;;  %v457_v58 = vld [vmem:[%s2796_s22 + $0xc4] sm:$0xff]  ;;  %454 = vst [vmem:[%s2792_s21 + $0xa8] sm:$0xff] %v453_v56  ;;  %v459_v59 = vld [vmem:[%s2796_s22 + $0xcc] sm:$0xff]  ;;  %345 = sbr.rel (!%p342_p8) target bundleno = 108 (0x6c), region = 345 }
  0x78   : >> { %456 = vst [vmem:[%s2792_s21 + $0xb0] sm:$0xff] %v455_v57  ;;  %458 = vst [vmem:[%s2792_s21 + $0xb8] sm:$0xff] %v457_v58  ;;  %v461_v60 = vld [vmem:[%s2796_s22 + $0xd4] sm:$0xff]  ;;  %v463_v61 = vld [vmem:[%s2796_s22 + $0xdc] sm:$0xff] }
  0x79   : >> { %460 = vst [vmem:[%s2792_s21 + $0xc0] sm:$0xff] %v459_v59  ;;  %462 = vst [vmem:[%s2792_s21 + $0xc8] sm:$0xff] %v461_v60  ;;  %v465_v62 = vld [vmem:[%s2796_s22 + $0xe4] sm:$0xff]  ;;  %v467_v63 = vld [vmem:[%s2796_s22 + $0xec] sm:$0xff] }
  0x7a   : >> { %464 = vst [vmem:[%s2792_s21 + $0xd0] sm:$0xff] %v463_v61  ;;  %v469_v0 = vld [vmem:[%s2796_s22 + $0xf4] sm:$0xff]  ;;  %466 = vst [vmem:[%s2792_s21 + $0xd8] sm:$0xff] %v465_v62  ;;  %v471_v1 = vld [vmem:[%s2796_s22 + $0xfc] sm:$0xff] }
  0x7b   : >> { %468 = vst [vmem:[%s2792_s21 + $0xe0] sm:$0xff] %v467_v63  ;;  %470 = vst [vmem:[%s2792_s21 + $0xe8] sm:$0xff] %v469_v0  ;;  %v473_v2 = vld [vmem:[%s2796_s22 + $0x104] sm:$0xff]  ;;  %v475_v3 = vld [vmem:[%s2796_s22 + $0x10c] sm:$0xff]  ;;  %s4455_s22 = smov %s482_s8 }
  0x7c   : >> { %472 = vst [vmem:[%s2792_s21 + $0xf0] sm:$0xff] %v471_v1  ;;  %474 = vst [vmem:[%s2792_s21 + $0xf8] sm:$0xff] %v473_v2 }
  0x7d   : >> { %476 = vst [vmem:[%s2792_s21 + $0x100] sm:$0xff] %v475_v3  ;;  %s4454_s21 = smov %s483_s14 }
  0x7e PF: > { %s3282_s5 = sand.u32 31, %s336_s7   ;;  %s2115_s3 = sshll.u32 %s3171_s20, 12 }
  0x7f   : > { %s488_s4 = sshra.s32 %s2115_s3, 4  ;;  %p2048_p9 = scmp.le.s32.totalorder %s3282_s5, 0 }
  0x80   : > { %s3286_s6 = scalar_lea.vmem %s3020_s26, %s488_s4   ;;  %s492_s27 = scalar_lea.vmem %s3024_s29, %s488_s4 [#allocation2]  }
  0x81   : > { %1874 = sbr.rel (%p2048_p9) target bundleno = 146 (0x92), region = 350  ;;  %s2806_s25 = smov (!%p2048_p9), %s492_s27  }
  0x82   : > { %s2810_s24 = smov (!%p2048_p9), %s3286_s6   ;;  %s2814_s8 = smov (!%p2048_p9), 0  }
  0x83   : > { %s2818_s21 = smov (!%p2048_p9), 0  }
  0x88 LB: >> { %v504_v4 = vld [vmem:[%s2812_s24] sm:$0xff]  ;;  %v506_v5 = vld [vmem:[%s2812_s24 + $0x14] sm:$0xff]  ;;  %s508_s7 = sadd.s32 1, %s2816_s8  ;;  %s498_s21 = sadd.s32 1, %s2820_s21   ;;  %s2820_s21 = sphi %s2818_s21, %s498_s21   ;;  %s2816_s8 = sphi %s2814_s8, %s2815_s8   ;;  %s2812_s24 = sphi %s2810_s24, %s513_s24   ;;  %s2808_s25 = sphi %s2806_s25, %s514_s25  }
  0x89   : >> { %505 = vst [vmem:[%s2808_s25] sm:$0xff] %v504_v4  ;;  %507 = vst [vmem:[%s2808_s25 + $0x8] sm:$0xff] %v506_v5  ;;  %p509_p10 = scmp.ge.s32.totalorder %s508_s7, %s3282_s5  ;;  %p497_p11 = scmp.ge.s32.totalorder %s498_s21, %s3282_s5 }
  0x8b   : >> { %s4497_s7 = smov (%p509_p10, %s508_s7), 0  ;;  %500 = sbr.rel (!%p497_p11) target bundleno = 136 (0x88), region = 356 }
  0x8c   : >> { %s2049_s20 = sshll.u32 %s4497_s7, 3  ;;  %s2815_s8 = smov %s4497_s7  }
  0x8d   : >> { %s513_s24 = scalar_lea.vmem %s3286_s6, %s2049_s20   ;;  %s514_s25 = scalar_lea.vmem %s492_s27, %s2049_s20 [#allocation2]  }
  0x92 PF: > { %s2950_s22 = smov 0  }
  0x93   : > { %s515_s23 = sshllo.u32 %s2950_s22, %s3028_s30 }
  0x94   : > { %v524_v6 = vld [vmem:[%s3164_s15] sm:%s515_s23]  ;;  %v526_v7 = vld [vmem:[%s3164_s15 + $0x14] sm:%s515_s23] }
  0x95   : > { %525 = vst [vmem:[%s3167_s19] sm:%s515_s23] %v524_v6  ;;  %527 = vst [vmem:[%s3167_s19 + $0x8] sm:%s515_s23] %v526_v7 }
  0x96 PF: > { %p2051_p12 = scmp.ge.u32.totalorder %s3022_s28, 8 }
  0x97   : > { %s2951_s14 = smov (!%p2051_p12), 0  }
  0x98   : > { %130 = sbr.rel (%p2051_p12) target bundleno = 159 (0x9f), region = 32  ;;  %s131_s5 = sshllo.u32 (!%p2051_p12), %s2951_s14, %s3022_s28 }
  0x99   : > { %v140_v8 = vld [vmem:[%s3020_s26] sm:%s131_s5] (!%p2051_p12)  ;;  %v142_v9 = vld [vmem:[%s3020_s26 + $0x14] sm:%s131_s5] (!%p2051_p12) }
  0x9a   : > { %141 = vst [vmem:[%s3024_s29] sm:%s131_s5] (!%p2051_p12), %v140_v8  ;;  %143 = vst [vmem:[%s3024_s29 + $0x8] sm:%s131_s5] (!%p2051_p12), %v142_v9 }
  0x9f PF: > { %531 = sbr.rel (!%p3003_p4) target bundleno = 332 (0x14c), region = 86  ;;  %s533_s30 = sand.u32 (%p3003_p4), 1, %s2752_s10  }
  0xa0   : > { %s2053_s15 = sshll.u32 (%p3003_p4), %s2756_s11, 1  ;;  %s2052_s19 = sshll.u32 (%p3003_p4), %s533_s30, 3 }
  0xa1   : > { %s537_s3 = ssub.s32 (%p3003_p4), 5, %s2053_s15  ;;  %s2117_s4 = sshll.u32 (%p3003_p4), %s2756_s11, 2 }
  0xa2   : > { %p538_p13 = scmp.lt.s32.totalorder (%p3003_p4), %s537_s3, 2  ;;  %s3313_s29 = scalar_lea.vmem (%p3003_p4), %s4443_s1, %s2117_s4  }
  0xa3   : > { %s3317_s17 = scalar_lea.vmem (%p3003_p4), [#allocation3], %s2052_s19  }
  0xa6   : > { %s4499_s3 = smov (!%p538_p13, %s537_s3), 2 }
  0xa7   : > { %s2054_s6 = sshll.u32 %s4499_s3, 6  ;;  %s3315_s27 = sshll.u32 %s4499_s3, 1 }
  0xa8   : > { %p2058_p4 = scmp.eq.s32.totalorder %s2054_s6, 0 }
  0xa9   : > { %p548_p0 = scmp.lt.u32.totalorder (!%p2058_p4), %s3315_s27, 8 }
  0xaa   : > { %547 = sbr.rel (%p2058_p4) target bundleno = 332 (0x14c), region = 90 }
  0xb1   : > { %551 = sbr.rel (%p548_p0) target bundleno = 323 (0x143), region = 94  ;;  %s3321_s25 = sand.u32 (!%p548_p0), 7, %s3315_s27  }
  0xb2   : > { %p569_p1 = scmp.eq.s32.totalorder (!%p548_p0), %s3321_s25, 0  ;;  %p2059_p2 = scmp.ne.s32.totalorder (!%p548_p0), %s3321_s25, 0 }
  0xb8   : > { %572 = sbr.rel (%p2059_p2) target bundleno = 251 (0xfb), region = 109  ;;  %s573_s24 = sshrl.u32 (!%p2059_p2), %s3315_s27, 3 }
  0xb9   : > { %s3328_s8 = sshrl.u32 (!%p2059_p2), %s573_s24, 5 }
  0xba   : > { %p2060_p3 = scmp.le.s32.totalorder (!%p2059_p2), %s3328_s8, 0 }
  0xbf   : > { %1888 = sbr.rel (%p2060_p3) target bundleno = 231 (0xe7), region = 361  ;;  %s4457_s21 = smov (!%p2060_p3), %s3317_s17 }
  0xc0   : > { %s4458_s7 = smov (!%p2060_p3), %s3313_s29  ;;  %s3337_s20 = smov (!%p2060_p3), 0  }
  0xc1   : > { %s3339_s22 = smov (!%p2060_p3), 0  }
  0xc6 LB: >> { %v586_v10 = vld [vmem:[%s2828_s7] sm:$0xff]  ;;  %v588_v11 = vld [vmem:[%s2828_s7 + $0x8] sm:$0xff]  ;;  %v590_v12 = vld [vmem:[%s2828_s7 + $0x10] sm:$0xff]  ;;  %s714_s23 = sadd.s32 1, %s2832_s20  ;;  %s580_s22 = sadd.s32 1, %s2836_s22   ;;  %s2836_s22 = sphi %s3339_s22, %s580_s22   ;;  %s2832_s20 = sphi %s3337_s20, %s4461_s20   ;;  %s2828_s7 = sphi %s4458_s7, %s4460_s7   ;;  %s2824_s21 = sphi %s4457_s21, %s4459_s21  }
  0xc7   : >> { %587 = vst [vmem:[%s2824_s21] sm:$0xff] %v586_v10  ;;  %589 = vst [vmem:[%s2824_s21 + $0x8] sm:$0xff] %v588_v11  ;;  %v592_v13 = vld [vmem:[%s2828_s7 + $0x18] sm:$0xff]  ;;  %v594_v14 = vld [vmem:[%s2828_s7 + $0x20] sm:$0xff]  ;;  %p715_p6 = scmp.ge.s32.totalorder %s714_s23, %s3328_s8  ;;  %p579_p7 = scmp.ge.s32.totalorder %s580_s22, %s3328_s8 }
  0xc8   : >> { %591 = vst [vmem:[%s2824_s21 + $0x10] sm:$0xff] %v590_v12  ;;  %v596_v15 = vld [vmem:[%s2828_s7 + $0x28] sm:$0xff]  ;;  %593 = vst [vmem:[%s2824_s21 + $0x18] sm:$0xff] %v592_v13  ;;  %v598_v16 = vld [vmem:[%s2828_s7 + $0x30] sm:$0xff] }
  0xc9   : >> { %595 = vst [vmem:[%s2824_s21 + $0x20] sm:$0xff] %v594_v14  ;;  %597 = vst [vmem:[%s2824_s21 + $0x28] sm:$0xff] %v596_v15  ;;  %v600_v17 = vld [vmem:[%s2828_s7 + $0x38] sm:$0xff]  ;;  %v602_v18 = vld [vmem:[%s2828_s7 + $0x40] sm:$0xff]  ;;  %s4501_s23 = smov (%p715_p6, %s714_s23), 0 }
  0xca   : >> { %599 = vst [vmem:[%s2824_s21 + $0x30] sm:$0xff] %v598_v16  ;;  %601 = vst [vmem:[%s2824_s21 + $0x38] sm:$0xff] %v600_v17  ;;  %v604_v19 = vld [vmem:[%s2828_s7 + $0x48] sm:$0xff]  ;;  %v606_v20 = vld [vmem:[%s2828_s7 + $0x50] sm:$0xff]  ;;  %s2061_s14 = sshll.u32 %s4501_s23, 8  ;;  %s4461_s20 = smov %s4501_s23 }
  0xcb   : >> { %603 = vst [vmem:[%s2824_s21 + $0x40] sm:$0xff] %v602_v18  ;;  %v608_v21 = vld [vmem:[%s2828_s7 + $0x58] sm:$0xff]  ;;  %605 = vst [vmem:[%s2824_s21 + $0x48] sm:$0xff] %v604_v19  ;;  %v610_v22 = vld [vmem:[%s2828_s7 + $0x60] sm:$0xff]  ;;  %s3395_s5 = scalar_lea.vmem %s3313_s29, %s2061_s14   ;;  %s3398_s30 = scalar_lea.vmem %s3317_s17, %s2061_s14 [#allocation3]  }
  0xcc   : >> { %607 = vst [vmem:[%s2824_s21 + $0x50] sm:$0xff] %v606_v20  ;;  %609 = vst [vmem:[%s2824_s21 + $0x58] sm:$0xff] %v608_v21  ;;  %v612_v23 = vld [vmem:[%s2828_s7 + $0x68] sm:$0xff]  ;;  %v614_v24 = vld [vmem:[%s2828_s7 + $0x70] sm:$0xff] }
  0xcd   : >> { %611 = vst [vmem:[%s2824_s21 + $0x60] sm:$0xff] %v610_v22  ;;  %613 = vst [vmem:[%s2824_s21 + $0x68] sm:$0xff] %v612_v23  ;;  %v616_v25 = vld [vmem:[%s2828_s7 + $0x78] sm:$0xff]  ;;  %v618_v26 = vld [vmem:[%s2828_s7 + $0x80] sm:$0xff] }
  0xce   : >> { %615 = vst [vmem:[%s2824_s21 + $0x70] sm:$0xff] %v614_v24  ;;  %v620_v27 = vld [vmem:[%s2828_s7 + $0x88] sm:$0xff]  ;;  %617 = vst [vmem:[%s2824_s21 + $0x78] sm:$0xff] %v616_v25  ;;  %v622_v28 = vld [vmem:[%s2828_s7 + $0x90] sm:$0xff] }
  0xcf   : >> { %619 = vst [vmem:[%s2824_s21 + $0x80] sm:$0xff] %v618_v26  ;;  %621 = vst [vmem:[%s2824_s21 + $0x88] sm:$0xff] %v620_v27  ;;  %v624_v29 = vld [vmem:[%s2828_s7 + $0x98] sm:$0xff]  ;;  %v626_v30 = vld [vmem:[%s2828_s7 + $0xa0] sm:$0xff] }
  0xd0   : >> { %623 = vst [vmem:[%s2824_s21 + $0x90] sm:$0xff] %v622_v28  ;;  %625 = vst [vmem:[%s2824_s21 + $0x98] sm:$0xff] %v624_v29  ;;  %v628_v31 = vld [vmem:[%s2828_s7 + $0xa8] sm:$0xff]  ;;  %v630_v32 = vld [vmem:[%s2828_s7 + $0xb0] sm:$0xff] }
  0xd1   : >> { %627 = vst [vmem:[%s2824_s21 + $0xa0] sm:$0xff] %v626_v30  ;;  %v632_v33 = vld [vmem:[%s2828_s7 + $0xb8] sm:$0xff]  ;;  %629 = vst [vmem:[%s2824_s21 + $0xa8] sm:$0xff] %v628_v31  ;;  %v634_v34 = vld [vmem:[%s2828_s7 + $0xc0] sm:$0xff] }
  0xd2   : >> { %631 = vst [vmem:[%s2824_s21 + $0xb0] sm:$0xff] %v630_v32  ;;  %633 = vst [vmem:[%s2824_s21 + $0xb8] sm:$0xff] %v632_v33  ;;  %v636_v35 = vld [vmem:[%s2828_s7 + $0xc8] sm:$0xff]  ;;  %v638_v36 = vld [vmem:[%s2828_s7 + $0xd0] sm:$0xff] }
  0xd3   : >> { %635 = vst [vmem:[%s2824_s21 + $0xc0] sm:$0xff] %v634_v34  ;;  %637 = vst [vmem:[%s2824_s21 + $0xc8] sm:$0xff] %v636_v35  ;;  %v640_v37 = vld [vmem:[%s2828_s7 + $0xd8] sm:$0xff]  ;;  %v642_v38 = vld [vmem:[%s2828_s7 + $0xe0] sm:$0xff] }
  0xd4   : >> { %639 = vst [vmem:[%s2824_s21 + $0xd0] sm:$0xff] %v638_v36  ;;  %v644_v39 = vld [vmem:[%s2828_s7 + $0xe8] sm:$0xff]  ;;  %641 = vst [vmem:[%s2824_s21 + $0xd8] sm:$0xff] %v640_v37  ;;  %v646_v40 = vld [vmem:[%s2828_s7 + $0xf0] sm:$0xff] }
  0xd5   : >> { %643 = vst [vmem:[%s2824_s21 + $0xe0] sm:$0xff] %v642_v38  ;;  %645 = vst [vmem:[%s2824_s21 + $0xe8] sm:$0xff] %v644_v39  ;;  %v648_v41 = vld [vmem:[%s2828_s7 + $0xf8] sm:$0xff]  ;;  %v650_v42 = vld [vmem:[%s2828_s7 + $0xa] sm:$0xff] }
  0xd6   : >> { %647 = vst [vmem:[%s2824_s21 + $0xf0] sm:$0xff] %v646_v40  ;;  %649 = vst [vmem:[%s2824_s21 + $0xf8] sm:$0xff] %v648_v41  ;;  %v652_v43 = vld [vmem:[%s2828_s7 + $0x12] sm:$0xff]  ;;  %v654_v44 = vld [vmem:[%s2828_s7 + $0x1a] sm:$0xff] }
  0xd7   : >> { %651 = vst [vmem:[%s2824_s21 + $0x4] sm:$0xff] %v650_v42  ;;  %v656_v45 = vld [vmem:[%s2828_s7 + $0x22] sm:$0xff]  ;;  %653 = vst [vmem:[%s2824_s21 + $0xc] sm:$0xff] %v652_v43  ;;  %v658_v46 = vld [vmem:[%s2828_s7 + $0x2a] sm:$0xff] }
  0xd8   : >> { %655 = vst [vmem:[%s2824_s21 + $0x14] sm:$0xff] %v654_v44  ;;  %657 = vst [vmem:[%s2824_s21 + $0x1c] sm:$0xff] %v656_v45  ;;  %v660_v47 = vld [vmem:[%s2828_s7 + $0x32] sm:$0xff]  ;;  %v662_v48 = vld [vmem:[%s2828_s7 + $0x3a] sm:$0xff] }
  0xd9   : >> { %659 = vst [vmem:[%s2824_s21 + $0x24] sm:$0xff] %v658_v46  ;;  %661 = vst [vmem:[%s2824_s21 + $0x2c] sm:$0xff] %v660_v47  ;;  %v664_v49 = vld [vmem:[%s2828_s7 + $0x42] sm:$0xff]  ;;  %v666_v50 = vld [vmem:[%s2828_s7 + $0x4a] sm:$0xff] }
  0xda   : >> { %663 = vst [vmem:[%s2824_s21 + $0x34] sm:$0xff] %v662_v48  ;;  %v668_v51 = vld [vmem:[%s2828_s7 + $0x52] sm:$0xff]  ;;  %665 = vst [vmem:[%s2824_s21 + $0x3c] sm:$0xff] %v664_v49  ;;  %v670_v52 = vld [vmem:[%s2828_s7 + $0x5a] sm:$0xff] }
  0xdb   : >> { %667 = vst [vmem:[%s2824_s21 + $0x44] sm:$0xff] %v666_v50  ;;  %669 = vst [vmem:[%s2824_s21 + $0x4c] sm:$0xff] %v668_v51  ;;  %v672_v53 = vld [vmem:[%s2828_s7 + $0x62] sm:$0xff]  ;;  %v674_v54 = vld [vmem:[%s2828_s7 + $0x6a] sm:$0xff] }
  0xdc   : >> { %671 = vst [vmem:[%s2824_s21 + $0x54] sm:$0xff] %v670_v52  ;;  %673 = vst [vmem:[%s2824_s21 + $0x5c] sm:$0xff] %v672_v53  ;;  %v676_v55 = vld [vmem:[%s2828_s7 + $0x72] sm:$0xff]  ;;  %v678_v56 = vld [vmem:[%s2828_s7 + $0x7a] sm:$0xff] }
  0xdd   : >> { %675 = vst [vmem:[%s2824_s21 + $0x64] sm:$0xff] %v674_v54  ;;  %v680_v57 = vld [vmem:[%s2828_s7 + $0x82] sm:$0xff]  ;;  %677 = vst [vmem:[%s2824_s21 + $0x6c] sm:$0xff] %v676_v55  ;;  %v682_v58 = vld [vmem:[%s2828_s7 + $0x8a] sm:$0xff] }
  0xde   : >> { %679 = vst [vmem:[%s2824_s21 + $0x74] sm:$0xff] %v678_v56  ;;  %681 = vst [vmem:[%s2824_s21 + $0x7c] sm:$0xff] %v680_v57  ;;  %v684_v59 = vld [vmem:[%s2828_s7 + $0x92] sm:$0xff]  ;;  %v686_v60 = vld [vmem:[%s2828_s7 + $0x9a] sm:$0xff] }
  0xdf   : >> { %683 = vst [vmem:[%s2824_s21 + $0x84] sm:$0xff] %v682_v58  ;;  %685 = vst [vmem:[%s2824_s21 + $0x8c] sm:$0xff] %v684_v59  ;;  %v688_v61 = vld [vmem:[%s2828_s7 + $0xa2] sm:$0xff]  ;;  %v690_v62 = vld [vmem:[%s2828_s7 + $0xaa] sm:$0xff] }
  0xe0   : >> { %687 = vst [vmem:[%s2824_s21 + $0x94] sm:$0xff] %v686_v60  ;;  %v692_v63 = vld [vmem:[%s2828_s7 + $0xb2] sm:$0xff]  ;;  %689 = vst [vmem:[%s2824_s21 + $0x9c] sm:$0xff] %v688_v61  ;;  %v694_v0 = vld [vmem:[%s2828_s7 + $0xba] sm:$0xff]  ;;  %582 = sbr.rel (!%p579_p7) target bundleno = 198 (0xc6), region = 367 }
  0xe1   : >> { %691 = vst [vmem:[%s2824_s21 + $0xa4] sm:$0xff] %v690_v62  ;;  %693 = vst [vmem:[%s2824_s21 + $0xac] sm:$0xff] %v692_v63  ;;  %v696_v1 = vld [vmem:[%s2828_s7 + $0xc2] sm:$0xff]  ;;  %v698_v2 = vld [vmem:[%s2828_s7 + $0xca] sm:$0xff] }
  0xe2   : >> { %695 = vst [vmem:[%s2824_s21 + $0xb4] sm:$0xff] %v694_v0  ;;  %697 = vst [vmem:[%s2824_s21 + $0xbc] sm:$0xff] %v696_v1  ;;  %v700_v3 = vld [vmem:[%s2828_s7 + $0xd2] sm:$0xff]  ;;  %v702_v4 = vld [vmem:[%s2828_s7 + $0xda] sm:$0xff] }
  0xe3   : >> { %699 = vst [vmem:[%s2824_s21 + $0xc4] sm:$0xff] %v698_v2  ;;  %v704_v5 = vld [vmem:[%s2828_s7 + $0xe2] sm:$0xff]  ;;  %701 = vst [vmem:[%s2824_s21 + $0xcc] sm:$0xff] %v700_v3  ;;  %v706_v6 = vld [vmem:[%s2828_s7 + $0xea] sm:$0xff] }
  0xe4   : >> { %703 = vst [vmem:[%s2824_s21 + $0xd4] sm:$0xff] %v702_v4  ;;  %705 = vst [vmem:[%s2824_s21 + $0xdc] sm:$0xff] %v704_v5  ;;  %v708_v7 = vld [vmem:[%s2828_s7 + $0xf2] sm:$0xff]  ;;  %v710_v8 = vld [vmem:[%s2828_s7 + $0xfa] sm:$0xff] }
  0xe5   : >> { %707 = vst [vmem:[%s2824_s21 + $0xe4] sm:$0xff] %v706_v6  ;;  %709 = vst [vmem:[%s2824_s21 + $0xec] sm:$0xff] %v708_v7  ;;  %v712_v9 = vld [vmem:[%s2828_s7 + $0x102] sm:$0xff]  ;;  %s4460_s7 = smov %s3395_s5 }
  0xe6   : >> { %711 = vst [vmem:[%s2824_s21 + $0xf4] sm:$0xff] %v710_v8  ;;  %713 = vst [vmem:[%s2824_s21 + $0xfc] sm:$0xff] %v712_v9  ;;  %s4459_s21 = smov %s3398_s30 }
  0xe7 PF: > { %s3504_s15 = sand.u32 31, %s573_s24   ;;  %s2118_s19 = sshll.u32 %s3328_s8, 12 }
  0xe8   : > { %s725_s3 = sshra.s32 %s2118_s19, 4  ;;  %p2066_p8 = scmp.le.s32.totalorder %s3504_s15, 0 }
  0xe9   : > { %s3508_s4 = scalar_lea.vmem %s3313_s29, %s725_s3   ;;  %s729_s28 = scalar_lea.vmem %s3317_s17, %s725_s3 [#allocation3]  }
  0xea   : > { %1902 = sbr.rel (%p2066_p8) target bundleno = 251 (0xfb), region = 372  ;;  %s2838_s26 = smov (!%p2066_p8), %s729_s28  }
  0xeb   : > { %s2842_s6 = smov (!%p2066_p8), %s3508_s4   ;;  %s2846_s22 = smov (!%p2066_p8), 0  }
  0xec   : > { %s2850_s21 = smov (!%p2066_p8), 0  }
  0xf1 LB: >> { %v741_v10 = vld [vmem:[%s2844_s6] sm:$0xff]  ;;  %v743_v11 = vld [vmem:[%s2844_s6 + $0xa] sm:$0xff]  ;;  %s745_s24 = sadd.s32 1, %s2848_s22  ;;  %s735_s21 = sadd.s32 1, %s2852_s21   ;;  %s2852_s21 = sphi %s2850_s21, %s735_s21   ;;  %s2848_s22 = sphi %s2846_s22, %s2847_s22   ;;  %s2844_s6 = sphi %s2842_s6, %s750_s6   ;;  %s2840_s26 = sphi %s2838_s26, %s751_s26  }
  0xf2   : >> { %742 = vst [vmem:[%s2840_s26] sm:$0xff] %v741_v10  ;;  %p746_p9 = scmp.ge.s32.totalorder %s745_s24, %s3504_s15  ;;  %p734_p10 = scmp.ge.s32.totalorder %s735_s21, %s3504_s15 }
  0xf3   : >> { %744 = vst [vmem:[%s2840_s26 + $0x4] sm:$0xff] %v743_v11 }
  0xf4   : >> { %s4503_s24 = smov (%p746_p9, %s745_s24), 0  ;;  %737 = sbr.rel (!%p734_p10) target bundleno = 241 (0xf1), region = 378 }
  0xf5   : >> { %s2067_s8 = sshll.u32 %s4503_s24, 3  ;;  %s2847_s22 = smov %s4503_s24  }
  0xf6   : >> { %s750_s6 = scalar_lea.vmem %s3508_s4, %s2067_s8   ;;  %s751_s26 = scalar_lea.vmem %s729_s28, %s2067_s8 [#allocation3]  }
  0xfb PF: > { %754 = sbr.rel (%p569_p1) target bundleno = 323 (0x143), region = 127  ;;  %s756_s7 = ssub.s32 (!%p569_p1), %s3315_s27, %s3321_s25 }
  0xfc   : > { %s760_s20 = sshrl.u32 (!%p569_p1), %s3315_s27, 3  ;;  %s3522_s23 = scalar_lea.vmem (!%p569_p1), %s3313_s29, %s756_s7 }
  0xfd   : > { %s3525_s14 = scalar_lea.vmem (!%p569_p1), %s3317_s17, %s756_s7 [#allocation3]  ;;  %s3529_s5 = sshrl.u32 (!%p569_p1), %s760_s20, 5 }
  0xfe   : > { %p2069_p11 = scmp.le.s32.totalorder (!%p569_p1), %s3529_s5, 0 }
 0x102   : > { %1916 = sbr.rel (%p2069_p11) target bundleno = 298 (0x12a), region = 383  ;;  %s4462_s30 = smov (!%p2069_p11), %s3317_s17 }
 0x103   : > { %s4463_s15 = smov (!%p2069_p11), %s3313_s29  ;;  %s3538_s19 = smov (!%p2069_p11), 0  }
 0x104   : > { %s3540_s3 = smov (!%p2069_p11), 0  }
 0x109 LB: >> { %v773_v12 = vld [vmem:[%s2860_s15] sm:$0xff]  ;;  %v775_v13 = vld [vmem:[%s2860_s15 + $0x8] sm:$0xff]  ;;  %v777_v14 = vld [vmem:[%s2860_s15 + $0x10] sm:$0xff]  ;;  %s901_s4 = sadd.s32 1, %s2864_s19  ;;  %s767_s3 = sadd.s32 1, %s2868_s3   ;;  %s2868_s3 = sphi %s3540_s3, %s767_s3   ;;  %s2864_s19 = sphi %s3538_s19, %s4466_s19   ;;  %s2860_s15 = sphi %s4463_s15, %s4465_s15   ;;  %s2856_s30 = sphi %s4462_s30, %s4464_s30  }
 0x10a   : >> { %774 = vst [vmem:[%s2856_s30] sm:$0xff] %v773_v12  ;;  %776 = vst [vmem:[%s2856_s30 + $0x8] sm:$0xff] %v775_v13  ;;  %v779_v15 = vld [vmem:[%s2860_s15 + $0x18] sm:$0xff]  ;;  %v781_v16 = vld [vmem:[%s2860_s15 + $0x20] sm:$0xff]  ;;  %p902_p12 = scmp.ge.s32.totalorder %s901_s4, %s3529_s5  ;;  %p766_p13 = scmp.ge.s32.totalorder %s767_s3, %s3529_s5 }
 0x10b   : >> { %778 = vst [vmem:[%s2856_s30 + $0x10] sm:$0xff] %v777_v14  ;;  %v783_v17 = vld [vmem:[%s2860_s15 + $0x28] sm:$0xff]  ;;  %780 = vst [vmem:[%s2856_s30 + $0x18] sm:$0xff] %v779_v15  ;;  %v785_v18 = vld [vmem:[%s2860_s15 + $0x30] sm:$0xff] }
 0x10c   : >> { %782 = vst [vmem:[%s2856_s30 + $0x20] sm:$0xff] %v781_v16  ;;  %784 = vst [vmem:[%s2856_s30 + $0x28] sm:$0xff] %v783_v17  ;;  %v787_v19 = vld [vmem:[%s2860_s15 + $0x38] sm:$0xff]  ;;  %v789_v20 = vld [vmem:[%s2860_s15 + $0x40] sm:$0xff]  ;;  %s4505_s4 = smov (%p902_p12, %s901_s4), 0 }
 0x10d   : >> { %786 = vst [vmem:[%s2856_s30 + $0x30] sm:$0xff] %v785_v18  ;;  %788 = vst [vmem:[%s2856_s30 + $0x38] sm:$0xff] %v787_v19  ;;  %v791_v21 = vld [vmem:[%s2860_s15 + $0x48] sm:$0xff]  ;;  %v793_v22 = vld [vmem:[%s2860_s15 + $0x50] sm:$0xff]  ;;  %s2070_s28 = sshll.u32 %s4505_s4, 8  ;;  %s4466_s19 = smov %s4505_s4 }
 0x10e   : >> { %790 = vst [vmem:[%s2856_s30 + $0x40] sm:$0xff] %v789_v20  ;;  %v795_v23 = vld [vmem:[%s2860_s15 + $0x58] sm:$0xff]  ;;  %792 = vst [vmem:[%s2856_s30 + $0x48] sm:$0xff] %v791_v21  ;;  %v797_v24 = vld [vmem:[%s2860_s15 + $0x60] sm:$0xff]  ;;  %s3596_s26 = scalar_lea.vmem %s3313_s29, %s2070_s28   ;;  %s3599_s6 = scalar_lea.vmem %s3317_s17, %s2070_s28 [#allocation3]  }
 0x10f   : >> { %794 = vst [vmem:[%s2856_s30 + $0x50] sm:$0xff] %v793_v22  ;;  %796 = vst [vmem:[%s2856_s30 + $0x58] sm:$0xff] %v795_v23  ;;  %v799_v25 = vld [vmem:[%s2860_s15 + $0x68] sm:$0xff]  ;;  %v801_v26 = vld [vmem:[%s2860_s15 + $0x70] sm:$0xff] }
 0x110   : >> { %798 = vst [vmem:[%s2856_s30 + $0x60] sm:$0xff] %v797_v24  ;;  %800 = vst [vmem:[%s2856_s30 + $0x68] sm:$0xff] %v799_v25  ;;  %v803_v27 = vld [vmem:[%s2860_s15 + $0x78] sm:$0xff]  ;;  %v805_v28 = vld [vmem:[%s2860_s15 + $0x80] sm:$0xff] }
 0x111   : >> { %802 = vst [vmem:[%s2856_s30 + $0x70] sm:$0xff] %v801_v26  ;;  %v807_v29 = vld [vmem:[%s2860_s15 + $0x88] sm:$0xff]  ;;  %804 = vst [vmem:[%s2856_s30 + $0x78] sm:$0xff] %v803_v27  ;;  %v809_v30 = vld [vmem:[%s2860_s15 + $0x90] sm:$0xff] }
 0x112   : >> { %806 = vst [vmem:[%s2856_s30 + $0x80] sm:$0xff] %v805_v28  ;;  %808 = vst [vmem:[%s2856_s30 + $0x88] sm:$0xff] %v807_v29  ;;  %v811_v31 = vld [vmem:[%s2860_s15 + $0x98] sm:$0xff]  ;;  %v813_v32 = vld [vmem:[%s2860_s15 + $0xa0] sm:$0xff] }
 0x113   : >> { %810 = vst [vmem:[%s2856_s30 + $0x90] sm:$0xff] %v809_v30  ;;  %812 = vst [vmem:[%s2856_s30 + $0x98] sm:$0xff] %v811_v31  ;;  %v815_v33 = vld [vmem:[%s2860_s15 + $0xa8] sm:$0xff]  ;;  %v817_v34 = vld [vmem:[%s2860_s15 + $0xb0] sm:$0xff] }
 0x114   : >> { %814 = vst [vmem:[%s2856_s30 + $0xa0] sm:$0xff] %v813_v32  ;;  %v819_v35 = vld [vmem:[%s2860_s15 + $0xb8] sm:$0xff]  ;;  %816 = vst [vmem:[%s2856_s30 + $0xa8] sm:$0xff] %v815_v33  ;;  %v821_v36 = vld [vmem:[%s2860_s15 + $0xc0] sm:$0xff] }
 0x115   : >> { %818 = vst [vmem:[%s2856_s30 + $0xb0] sm:$0xff] %v817_v34  ;;  %820 = vst [vmem:[%s2856_s30 + $0xb8] sm:$0xff] %v819_v35  ;;  %v823_v37 = vld [vmem:[%s2860_s15 + $0xc8] sm:$0xff]  ;;  %v825_v38 = vld [vmem:[%s2860_s15 + $0xd0] sm:$0xff] }
 0x116   : >> { %822 = vst [vmem:[%s2856_s30 + $0xc0] sm:$0xff] %v821_v36  ;;  %824 = vst [vmem:[%s2856_s30 + $0xc8] sm:$0xff] %v823_v37  ;;  %v827_v39 = vld [vmem:[%s2860_s15 + $0xd8] sm:$0xff]  ;;  %v829_v40 = vld [vmem:[%s2860_s15 + $0xe0] sm:$0xff] }
 0x117   : >> { %826 = vst [vmem:[%s2856_s30 + $0xd0] sm:$0xff] %v825_v38  ;;  %v831_v41 = vld [vmem:[%s2860_s15 + $0xe8] sm:$0xff]  ;;  %828 = vst [vmem:[%s2856_s30 + $0xd8] sm:$0xff] %v827_v39  ;;  %v833_v42 = vld [vmem:[%s2860_s15 + $0xf0] sm:$0xff] }
 0x118   : >> { %830 = vst [vmem:[%s2856_s30 + $0xe0] sm:$0xff] %v829_v40  ;;  %832 = vst [vmem:[%s2856_s30 + $0xe8] sm:$0xff] %v831_v41  ;;  %v835_v43 = vld [vmem:[%s2860_s15 + $0xf8] sm:$0xff]  ;;  %v837_v44 = vld [vmem:[%s2860_s15 + $0xa] sm:$0xff] }
 0x119   : >> { %834 = vst [vmem:[%s2856_s30 + $0xf0] sm:$0xff] %v833_v42  ;;  %836 = vst [vmem:[%s2856_s30 + $0xf8] sm:$0xff] %v835_v43  ;;  %v839_v45 = vld [vmem:[%s2860_s15 + $0x12] sm:$0xff]  ;;  %v841_v46 = vld [vmem:[%s2860_s15 + $0x1a] sm:$0xff] }
 0x11a   : >> { %838 = vst [vmem:[%s2856_s30 + $0x4] sm:$0xff] %v837_v44  ;;  %v843_v47 = vld [vmem:[%s2860_s15 + $0x22] sm:$0xff]  ;;  %840 = vst [vmem:[%s2856_s30 + $0xc] sm:$0xff] %v839_v45  ;;  %v845_v48 = vld [vmem:[%s2860_s15 + $0x2a] sm:$0xff] }
 0x11b   : >> { %842 = vst [vmem:[%s2856_s30 + $0x14] sm:$0xff] %v841_v46  ;;  %844 = vst [vmem:[%s2856_s30 + $0x1c] sm:$0xff] %v843_v47  ;;  %v847_v49 = vld [vmem:[%s2860_s15 + $0x32] sm:$0xff]  ;;  %v849_v50 = vld [vmem:[%s2860_s15 + $0x3a] sm:$0xff] }
 0x11c   : >> { %846 = vst [vmem:[%s2856_s30 + $0x24] sm:$0xff] %v845_v48  ;;  %848 = vst [vmem:[%s2856_s30 + $0x2c] sm:$0xff] %v847_v49  ;;  %v851_v51 = vld [vmem:[%s2860_s15 + $0x42] sm:$0xff]  ;;  %v853_v52 = vld [vmem:[%s2860_s15 + $0x4a] sm:$0xff] }
 0x11d   : >> { %850 = vst [vmem:[%s2856_s30 + $0x34] sm:$0xff] %v849_v50  ;;  %v855_v53 = vld [vmem:[%s2860_s15 + $0x52] sm:$0xff]  ;;  %852 = vst [vmem:[%s2856_s30 + $0x3c] sm:$0xff] %v851_v51  ;;  %v857_v54 = vld [vmem:[%s2860_s15 + $0x5a] sm:$0xff] }
 0x11e   : >> { %854 = vst [vmem:[%s2856_s30 + $0x44] sm:$0xff] %v853_v52  ;;  %856 = vst [vmem:[%s2856_s30 + $0x4c] sm:$0xff] %v855_v53  ;;  %v859_v55 = vld [vmem:[%s2860_s15 + $0x62] sm:$0xff]  ;;  %v861_v56 = vld [vmem:[%s2860_s15 + $0x6a] sm:$0xff] }
 0x11f   : >> { %858 = vst [vmem:[%s2856_s30 + $0x54] sm:$0xff] %v857_v54  ;;  %860 = vst [vmem:[%s2856_s30 + $0x5c] sm:$0xff] %v859_v55  ;;  %v863_v57 = vld [vmem:[%s2860_s15 + $0x72] sm:$0xff]  ;;  %v865_v58 = vld [vmem:[%s2860_s15 + $0x7a] sm:$0xff] }
 0x120   : >> { %862 = vst [vmem:[%s2856_s30 + $0x64] sm:$0xff] %v861_v56  ;;  %v867_v59 = vld [vmem:[%s2860_s15 + $0x82] sm:$0xff]  ;;  %864 = vst [vmem:[%s2856_s30 + $0x6c] sm:$0xff] %v863_v57  ;;  %v869_v60 = vld [vmem:[%s2860_s15 + $0x8a] sm:$0xff] }
 0x121   : >> { %866 = vst [vmem:[%s2856_s30 + $0x74] sm:$0xff] %v865_v58  ;;  %868 = vst [vmem:[%s2856_s30 + $0x7c] sm:$0xff] %v867_v59  ;;  %v871_v61 = vld [vmem:[%s2860_s15 + $0x92] sm:$0xff]  ;;  %v873_v62 = vld [vmem:[%s2860_s15 + $0x9a] sm:$0xff] }
 0x122   : >> { %870 = vst [vmem:[%s2856_s30 + $0x84] sm:$0xff] %v869_v60  ;;  %872 = vst [vmem:[%s2856_s30 + $0x8c] sm:$0xff] %v871_v61  ;;  %v875_v63 = vld [vmem:[%s2860_s15 + $0xa2] sm:$0xff]  ;;  %v877_v0 = vld [vmem:[%s2860_s15 + $0xaa] sm:$0xff] }
 0x123   : >> { %874 = vst [vmem:[%s2856_s30 + $0x94] sm:$0xff] %v873_v62  ;;  %v879_v1 = vld [vmem:[%s2860_s15 + $0xb2] sm:$0xff]  ;;  %876 = vst [vmem:[%s2856_s30 + $0x9c] sm:$0xff] %v875_v63  ;;  %v881_v2 = vld [vmem:[%s2860_s15 + $0xba] sm:$0xff]  ;;  %769 = sbr.rel (!%p766_p13) target bundleno = 265 (0x109), region = 389 }
 0x124   : >> { %878 = vst [vmem:[%s2856_s30 + $0xa4] sm:$0xff] %v877_v0  ;;  %880 = vst [vmem:[%s2856_s30 + $0xac] sm:$0xff] %v879_v1  ;;  %v883_v3 = vld [vmem:[%s2860_s15 + $0xc2] sm:$0xff]  ;;  %v885_v4 = vld [vmem:[%s2860_s15 + $0xca] sm:$0xff] }
 0x125   : >> { %882 = vst [vmem:[%s2856_s30 + $0xb4] sm:$0xff] %v881_v2  ;;  %884 = vst [vmem:[%s2856_s30 + $0xbc] sm:$0xff] %v883_v3  ;;  %v887_v5 = vld [vmem:[%s2860_s15 + $0xd2] sm:$0xff]  ;;  %v889_v6 = vld [vmem:[%s2860_s15 + $0xda] sm:$0xff] }
 0x126   : >> { %886 = vst [vmem:[%s2856_s30 + $0xc4] sm:$0xff] %v885_v4  ;;  %v891_v7 = vld [vmem:[%s2860_s15 + $0xe2] sm:$0xff]  ;;  %888 = vst [vmem:[%s2856_s30 + $0xcc] sm:$0xff] %v887_v5  ;;  %v893_v8 = vld [vmem:[%s2860_s15 + $0xea] sm:$0xff] }
 0x127   : >> { %890 = vst [vmem:[%s2856_s30 + $0xd4] sm:$0xff] %v889_v6  ;;  %892 = vst [vmem:[%s2856_s30 + $0xdc] sm:$0xff] %v891_v7  ;;  %v895_v9 = vld [vmem:[%s2860_s15 + $0xf2] sm:$0xff]  ;;  %v897_v10 = vld [vmem:[%s2860_s15 + $0xfa] sm:$0xff] }
 0x128   : >> { %894 = vst [vmem:[%s2856_s30 + $0xe4] sm:$0xff] %v893_v8  ;;  %896 = vst [vmem:[%s2856_s30 + $0xec] sm:$0xff] %v895_v9  ;;  %v899_v11 = vld [vmem:[%s2860_s15 + $0x102] sm:$0xff]  ;;  %s4465_s15 = smov %s3596_s26 }
 0x129   : >> { %898 = vst [vmem:[%s2856_s30 + $0xf4] sm:$0xff] %v897_v10  ;;  %900 = vst [vmem:[%s2856_s30 + $0xfc] sm:$0xff] %v899_v11  ;;  %s4464_s30 = smov %s3599_s6 }
 0x12a PF: > { %s3705_s22 = sand.u32 31, %s760_s20   ;;  %s2120_s21 = sshll.u32 %s3529_s5, 12 }
 0x12b   : > { %s912_s24 = sshra.s32 %s2120_s21, 4  ;;  %p2075_p4 = scmp.le.s32.totalorder %s3705_s22, 0 }
 0x12c   : > { %s3709_s8 = scalar_lea.vmem %s3313_s29, %s912_s24   ;;  %s916_s7 = scalar_lea.vmem %s3317_s17, %s912_s24 [#allocation3]  }
 0x12d   : > { %1930 = sbr.rel (%p2075_p4) target bundleno = 318 (0x13e), region = 394  ;;  %s2870_s4 = smov (!%p2075_p4), %s916_s7  }
 0x12e   : > { %s2874_s3 = smov (!%p2075_p4), %s3709_s8   ;;  %s2878_s28 = smov (!%p2075_p4), 0  }
 0x12f   : > { %s2882_s30 = smov (!%p2075_p4), 0  }
 0x134 LB: >> { %v928_v12 = vld [vmem:[%s2876_s3] sm:$0xff]  ;;  %v930_v13 = vld [vmem:[%s2876_s3 + $0xa] sm:$0xff]  ;;  %s932_s20 = sadd.s32 1, %s2880_s28  ;;  %s922_s30 = sadd.s32 1, %s2884_s30   ;;  %s2884_s30 = sphi %s2882_s30, %s922_s30   ;;  %s2880_s28 = sphi %s2878_s28, %s2879_s28   ;;  %s2876_s3 = sphi %s2874_s3, %s937_s3   ;;  %s2872_s4 = sphi %s2870_s4, %s938_s4  }
 0x135   : >> { %929 = vst [vmem:[%s2872_s4] sm:$0xff] %v928_v12  ;;  %p933_p0 = scmp.ge.s32.totalorder %s932_s20, %s3705_s22  ;;  %p921_p1 = scmp.ge.s32.totalorder %s922_s30, %s3705_s22 }
 0x136   : >> { %931 = vst [vmem:[%s2872_s4 + $0x4] sm:$0xff] %v930_v13 }
 0x137   : >> { %s4507_s20 = smov (%p933_p0, %s932_s20), 0  ;;  %924 = sbr.rel (!%p921_p1) target bundleno = 308 (0x134), region = 400 }
 0x138   : >> { %s2076_s5 = sshll.u32 %s4507_s20, 3  ;;  %s2879_s28 = smov %s4507_s20  }
 0x139   : >> { %s937_s3 = scalar_lea.vmem %s3709_s8, %s2076_s5   ;;  %s938_s4 = scalar_lea.vmem %s916_s7, %s2076_s5 [#allocation3]  }
 0x13e PF: > { %s2952_s15 = smov 0  }
 0x13f   : > { %s939_s19 = sshllo.u32 %s2952_s15, %s3321_s25 }
 0x140   : > { %v948_v14 = vld [vmem:[%s3522_s23] sm:%s939_s19]  ;;  %v950_v15 = vld [vmem:[%s3522_s23 + $0xa] sm:%s939_s19] }
 0x141   : > { %949 = vst [vmem:[%s3525_s14] sm:%s939_s19] %v948_v14 }
 0x142   : > { %951 = vst [vmem:[%s3525_s14 + $0x4] sm:%s939_s19] %v950_v15 }
 0x143 PF: > { %p2078_p2 = scmp.ge.u32.totalorder %s3315_s27, 8 }
 0x144   : > { %s2953_s26 = smov (!%p2078_p2), 0  }
 0x145   : > { %554 = sbr.rel (%p2078_p2) target bundleno = 332 (0x14c), region = 98  ;;  %s555_s6 = sshllo.u32 (!%p2078_p2), %s2953_s26, %s3315_s27 }
 0x146   : > { %v564_v16 = vld [vmem:[%s3313_s29] sm:%s555_s6] (!%p2078_p2)  ;;  %v566_v17 = vld [vmem:[%s3313_s29 + $0xa] sm:%s555_s6] (!%p2078_p2) }
 0x147   : > { %565 = vst [vmem:[%s3317_s17] sm:%s555_s6] (!%p2078_p2), %v564_v16 }
 0x148   : > { %567 = vst [vmem:[%s3317_s17 + $0x4] sm:%s555_s6] (!%p2078_p2), %v566_v17 }
 0x14c PF: > { %p2079_p3 = scmp.ge.s32.totalorder %s2756_s11, 1  ;;  %p954_p6 = scmp.lt.s32.totalorder %s2756_s11, 4 }
 0x14e   : > { %p955_p7 = pnand %p2079_p3, %p954_p6 }
 0x14f   : > { %s3731_s25 = sand.u32 (!%p955_p7), 1, %s2748_s9   ;;  %v1035_v18 = vlaneseq (!%p955_p7)  ;;  %v2954_v19 = vmov (!%p955_p7), 1983009808   ;;  %vm1089_vm0 = vcmask (!%p955_p7), 1042432   ;;  %vm1094_vm1 = vcmask (!%p955_p7), 1045504  }
 0x150   : > { %958 = sbr.rel (%p955_p7) target bundleno = 552 (0x228), region = 152  ;;  %s2080_s27 = sshll.u32 (!%p955_p7), %s3731_s25, 4  ;;  %v1033_v20 = vunpack.c.l.s4 (!%p955_p7), %v2954_v19  ;;  %vm1103_vm2 = vcmask (!%p955_p7), 1044480   ;;  %vm1112_vm3 = vcmask (!%p955_p7), 1041408  }
 0x151   : > { %s2081_s29 = sshll.u32 (!%p955_p7), %s3731_s25, 3  ;;  %v1036_v21 = vshrl.u32 (!%p955_p7), %v1035_v18, 7  ;;  %s963_s17 = scalar_lea.vmem (!%p955_p7), [#allocation2], %s2080_s27 }
 0x152   : > { %v1007_v22 = vld [vmem:[%s963_s17] sm:$0x77] (!%p955_p7)  ;;  %s970_s23 = scalar_lea.vmem (!%p955_p7), [#allocation3], %s2081_s29  ;;  %v1034_v24 = vunpack.c.0.s8 (!%p955_p7), %v1033_v20  ;;  %v1008_v27 = vld [vmem:[%s963_s17 + $0x8] sm:$0x77] (!%p955_p7)  ;;  %s2082_s9 = sshll.u32 (!%p955_p7), %s3731_s25, 8 }
 0x153   : > { %v1011_v23 = vld [vmem:[%s970_s23] sm:$0xf] (!%p955_p7)  ;;  %v1009_v25 = vmax.f32 (!%p955_p7), %v1007_v22, 0.0  ;;  %v3735_v29 = vmax.f32 (!%p955_p7), %v1008_v27, 0.0  ;;  %v1012_v30 = vld [vmem:[%s970_s23 + $0x4] sm:$0xf] (!%p955_p7) }
 0x154   : > { %v1013_v26 = vmax.f32 (!%p955_p7), %v1011_v23, 0.0  ;;  %v1037_v28 = vsub.s32 (!%p955_p7), %v1034_v24, %v1036_v21  ;;  %v1014_v36 = vmax.f32 (!%p955_p7), %v1012_v30, 0.0  ;;  %s3751_s11 = scalar_lea.vmem (!%p955_p7), [#allocation4], %s2082_s9  }
 0x155   : > { %v1021_v31 = vrot.slane (!%p955_p7), %v1009_v25, 5  ;;  %v1017_v33 = vcombine.high (!%p955_p7), %v1009_v25, %v1009_v25  ;;  %v1077_v34 = vrot.slane (!%p955_p7), %v1009_v25, 3  ;;  %v1023_v37 = vrot.slane (!%p955_p7), %v3735_v29, 5 }
 0x156   : > { %v1031_v32 = vcombine.low (!%p955_p7), %v1013_v26, %v1013_v26  ;;  %v1045_v35 = vrot.slane (!%p955_p7), %v1013_v26, %v1037_v28  ;;  %v3741_v38 = vcombine.high (!%p955_p7), %v3735_v29, %v3735_v29  ;;  %v1047_v45 = vcombine.low (!%p955_p7), %v1014_v36, %v1014_v36 }
 0x157   : > { %v1090_v40 = vsel %vm1089_vm0, %v1009_v25, %v1021_v31  ;;  %v1022_v41 = vrot.slane %v1017_v33, 5  ;;  %v1078_v42 = vrot.slane %v1017_v33, 3  ;;  %v1092_v46 = vsel %vm1089_vm0, %v3735_v29, %v1023_v37  ;;  %s2084_s14 = sshll.u32 (%p3007_p5), %s2988_s12, 1  ;;  %s2122_s22 = sshll.u32 (%p3007_p5), %s2988_s12, 4 }
 0x158   : > { %v1038_v39 = vrot.slane %v1031_v32, %v1037_v28  ;;  %v1069_v43 = vrot.slane %v1045_v35, 5  ;;  %v1067_v44 = vcombine.high %v1045_v35, %v1045_v35  ;;  %v1024_v49 = vrot.slane %v3741_v38, 5  ;;  %s1173_s21 = ssub.s32 (%p3007_p5), 5, %s2084_s14  ;;  %s3811_s7 = scalar_lea.vmem (%p3007_p5), %s4444_s2, %s2122_s22  }
 0x159   : > { %v1091_v48 = vsel %vm1089_vm0, %v1017_v33, %v1022_v41  ;;  %v1061_v50 = vrot.slane %v1014_v36, %v1037_v28  ;;  %v1054_v54 = vrot.slane %v1047_v45, %v1037_v28  ;;  %v1079_v5 = vrot.slane %v3735_v29, 3  ;;  %p1174_p8 = scmp.lt.s32.totalorder (%p3007_p5), %s1173_s21, 2 }
 0x15a   : > { %v1046_v47 = vcombine.low %v1038_v39, %v1038_v39  ;;  %v1096_v51 = vsel %vm1094_vm1, %v1091_v48, %v1038_v39  ;;  %v1099_v52 = vsel %vm1089_vm0, %v1009_v25, %v1069_v43  ;;  %v1070_v53 = vrot.slane %v1067_v44, 5 }
 0x15b   : > { %v1114_v56 = vrot.slane %v1096_v51, 6  ;;  %1134 = vst [vmem:[%s3751_s11 + $0x8] sm:$0xff] %v1096_v51  ;;  %1136 = vst [vmem:[%s3751_s11 + $0x18] sm:$0xff] %v1096_v51  ;;  %v1104_v57 = vsel %vm1103_vm2, %v1099_v52, %v1077_v34  ;;  %v1093_v58 = vsel %vm1089_vm0, %v3741_v38, %v1024_v49  ;;  %v1062_v61 = vcombine.low %v1054_v54, %v1054_v54 }
 0x15c   : > { %v1095_v55 = vsel %vm1094_vm1, %v1090_v40, %v1046_v47  ;;  %1137 = vst [vmem:[%s3751_s11 + $0x20] sm:$0xff] %v1104_v57  ;;  %1139 = vst [vmem:[%s3751_s11 + $0x30] sm:$0xff] %v1104_v57  ;;  %v1100_v60 = vsel %vm1089_vm0, %v1017_v33, %v1070_v53  ;;  %v1098_v62 = vsel %vm1094_vm1, %v1093_v58, %v1054_v54  ;;  %v1071_v2 = vrot.slane %v1061_v50, 5 }
 0x15d   : > { %v1113_v59 = vrot.slane %v1095_v55, 6  ;;  %1133 = vst [vmem:[%s3751_s11] sm:$0xff] %v1095_v55  ;;  %1135 = vst [vmem:[%s3751_s11 + $0x10] sm:$0xff] %v1095_v55  ;;  %v1105_v63 = vsel %vm1103_vm2, %v1100_v60, %v1078_v42  ;;  %v1130_v0 = vsel %vm1112_vm3, %v1067_v44, %v1114_v56  ;;  %v1118_v1 = vrot.slane %v1098_v62, 6 }
 0x15e   : > { %1141 = vst [vmem:[%s3751_s11 + $0x40] sm:$0xff] %v1104_v57  ;;  %1146 = vst [vmem:[%s3751_s11 + $0x68] sm:$0xff] %v1114_v56  ;;  %v1097_v4 = vsel %vm1094_vm1, %v1092_v46, %v1062_v61  ;;  %v1068_v6 = vcombine.high %v1061_v50, %v1061_v50  ;;  %v1101_v8 = vsel %vm1089_vm0, %v3735_v29, %v1071_v2  ;;  %v1080_v9 = vrot.slane %v3741_v38, 3 }
 0x15f   : > { %1148 = vst [vmem:[%s3751_s11 + $0x78] sm:$0x3] %v1114_v56  ;;  %1150 = vst [vmem:[%s3751_s11 + $0x88] sm:$0xff] %v1098_v62  ;;  %v1129_v3 = vsel %vm1112_vm3, %v1045_v35, %v1113_v59  ;;  %v1117_v7 = vrot.slane %v1097_v4, 6  ;;  %v1106_v10 = vsel %vm1103_vm2, %v1101_v8, %v1079_v5 }
 0x160   : > { %1152 = vst [vmem:[%s3751_s11 + $0x98] sm:$0xff] %v1098_v62  ;;  %1145 = vst [vmem:[%s3751_s11 + $0x60] sm:$0xff] %v1113_v59  ;;  %v1072_v11 = vrot.slane %v1068_v6, 5  ;;  %v1132_v12 = vsel %vm1112_vm3, %v1068_v6, %v1118_v1 }
 0x161   : > { %1147 = vst [vmem:[%s3751_s11 + $0x70] sm:$0x3] %v1113_v59  ;;  %1138 = vst [vmem:[%s3751_s11 + $0x28] sm:$0xff] %v1105_v63  ;;  %v1131_v13 = vsel %vm1112_vm3, %v1061_v50, %v1117_v7 }
 0x162   : > { %1140 = vst [vmem:[%s3751_s11 + $0x38] sm:$0xff] %v1105_v63  ;;  %1142 = vst [vmem:[%s3751_s11 + $0x48] sm:$0xff] %v1105_v63  ;;  %v1102_v14 = vsel %vm1089_vm0, %v3741_v38, %v1072_v11 }
 0x163   : > { %1144 = vst [vmem:[%s3751_s11 + $0x58] sm:$0xff] %v1130_v0  ;;  %1143 = vst [vmem:[%s3751_s11 + $0x50] sm:$0xff] %v1129_v3  ;;  %v1107_v15 = vsel %vm1103_vm2, %v1102_v14, %v1080_v9 }
 0x164   : > { %1149 = vst [vmem:[%s3751_s11 + $0x80] sm:$0xff] %v1097_v4  ;;  %1151 = vst [vmem:[%s3751_s11 + $0x90] sm:$0xff] %v1097_v4  ;;  %1171 = sbr.rel (!%p3007_p5) target bundleno = 552 (0x228), region = 164 }
 0x165   : > { %1162 = vst [vmem:[%s3751_s11 + $0xe8] sm:$0xff] %v1118_v1  ;;  %1164 = vst [vmem:[%s3751_s11 + $0xf8] sm:$0x3] %v1118_v1 }
 0x166   : > { %1161 = vst [vmem:[%s3751_s11 + $0xe0] sm:$0xff] %v1117_v7  ;;  %1163 = vst [vmem:[%s3751_s11 + $0xf0] sm:$0x3] %v1117_v7 }
 0x167   : > { %1153 = vst [vmem:[%s3751_s11 + $0xa0] sm:$0xff] %v1106_v10  ;;  %1155 = vst [vmem:[%s3751_s11 + $0xb0] sm:$0xff] %v1106_v10 }
 0x168   : > { %1157 = vst [vmem:[%s3751_s11 + $0xc0] sm:$0xff] %v1106_v10  ;;  %1160 = vst [vmem:[%s3751_s11 + $0xd8] sm:$0xff] %v1132_v12 }
 0x169   : > { %1159 = vst [vmem:[%s3751_s11 + $0xd0] sm:$0xff] %v1131_v13  ;;  %1154 = vst [vmem:[%s3751_s11 + $0xa8] sm:$0xff] %v1107_v15 }
 0x16a   : > { %1156 = vst [vmem:[%s3751_s11 + $0xb8] sm:$0xff] %v1107_v15  ;;  %1158 = vst [vmem:[%s3751_s11 + $0xc8] sm:$0xff] %v1107_v15 }
 0x16b   : > { %s4509_s21 = smov (!%p1174_p8, %s1173_s21), 2 }
 0x16c   : > { %s2085_s4 = sshll.u32 %s4509_s21, 11  ;;  %s3813_s3 = sshll.u32 %s4509_s21, 3 }
 0x16d   : > { %p2089_p9 = scmp.eq.s32.totalorder %s2085_s4, 0 }
 0x16e   : > { %p1184_p10 = scmp.lt.u32.totalorder (!%p2089_p9), %s3813_s3, 8 }
 0x16f   : > { %1183 = sbr.rel (%p2089_p9) target bundleno = 552 (0x228), region = 168 }
 0x176   : > { %1187 = sbr.rel (%p1184_p10) target bundleno = 533 (0x215), region = 172  ;;  %s3817_s18 = sand.u32 (!%p1184_p10), 7, %s3813_s3  }
 0x177   : > { %p1233_p5 = scmp.eq.s32.totalorder (!%p1184_p10), %s3817_s18, 0  ;;  %p2090_p11 = scmp.ne.s32.totalorder (!%p1184_p10), %s3817_s18, 0 }
 0x17d   : > { %1236 = sbr.rel (%p2090_p11) target bundleno = 448 (0x1c0), region = 187  ;;  %s1237_s12 = sshrl.u32 (!%p2090_p11), %s3813_s3, 3 }
 0x17e   : > { %s3824_s28 = sshrl.u32 (!%p2090_p11), %s1237_s12, 2 }
 0x17f   : > { %p2091_p12 = scmp.le.s32.totalorder (!%p2090_p11), %s3824_s28, 0 }
 0x184   : > { %1944 = sbr.rel (%p2091_p12) target bundleno = 428 (0x1ac), region = 405  ;;  %s4467_s30 = smov (!%p2091_p12), %s3811_s7 }
 0x185   : > { %s4468_s20 = smov (!%p2091_p12), %s3751_s11  ;;  %s3833_s5 = smov (!%p2091_p12), 0  }
 0x186   : > { %s3835_s15 = smov (!%p2091_p12), 0  }
 0x18b LB: >> { %v1250_v16 = vld [vmem:[%s2892_s20] sm:$0xff]  ;;  %v1252_v17 = vld [vmem:[%s2892_s20 + $0x8] sm:$0xff]  ;;  %v1254_v18 = vld [vmem:[%s2892_s20 + $0x10] sm:$0xff]  ;;  %s1378_s19 = sadd.s32 1, %s2896_s5  ;;  %s1244_s15 = sadd.s32 1, %s2900_s15   ;;  %s2900_s15 = sphi %s3835_s15, %s1244_s15   ;;  %s2896_s5 = sphi %s3833_s5, %s4472_s5   ;;  %s2892_s20 = sphi %s4468_s20, %s4471_s20   ;;  %s2888_s30 = sphi %s4467_s30, %s4470_s30  }
 0x18c   : >> { %1251 = vst [vmem:[%s2888_s30] sm:$0xff] %v1250_v16  ;;  %1253 = vst [vmem:[%s2888_s30 + $0x8] sm:$0xff] %v1252_v17  ;;  %v1256_v19 = vld [vmem:[%s2892_s20 + $0x18] sm:$0xff]  ;;  %v1262_v20 = vld [vmem:[%s2892_s20 + $0x20] sm:$0xff]  ;;  %p3861_p13 = scmp.ge.s32.totalorder %s1378_s19, %s3824_s28  ;;  %p1243_p4 = scmp.ge.s32.totalorder %s1244_s15, %s3824_s28 }
 0x18d   : >> { %1255 = vst [vmem:[%s2888_s30 + $0x10] sm:$0xff] %v1254_v18  ;;  %1259 = vst [vmem:[%s2888_s30 + $0x28] sm:$0xff] %v1254_v18  ;;  %v1264_v21 = vld [vmem:[%s2892_s20 + $0x28] sm:$0xff]  ;;  %v1270_v22 = vld [vmem:[%s2892_s20 + $0x30] sm:$0xff] }
 0x18e   : >> { %1257 = vst [vmem:[%s2888_s30 + $0x18] sm:$0xff] %v1256_v19  ;;  %1261 = vst [vmem:[%s2888_s30 + $0x30] sm:$0xff] %v1256_v19  ;;  %v1272_v23 = vld [vmem:[%s2892_s20 + $0x38] sm:$0xff]  ;;  %v1278_v24 = vld [vmem:[%s2892_s20 + $0x40] sm:$0xff]  ;;  %s4511_s19 = smov (%p3861_p13, %s1378_s19), 0 }
 0x18f   : >> { %1263 = vst [vmem:[%s2888_s30 + $0x38] sm:$0xff] %v1262_v20  ;;  %1265 = vst [vmem:[%s2888_s30 + $0x40] sm:$0xff] %v1264_v21  ;;  %v1280_v25 = vld [vmem:[%s2892_s20 + $0x48] sm:$0xff]  ;;  %v1286_v26 = vld [vmem:[%s2892_s20 + $0x50] sm:$0xff]  ;;  %s2092_s6 = sshll.u32 %s4511_s19, 5  ;;  %s4472_s5 = smov %s4511_s19 }
 0x190   : >> { %1267 = vst [vmem:[%s2888_s30 + $0x50] sm:$0xff] %v1262_v20  ;;  %1269 = vst [vmem:[%s2888_s30 + $0x58] sm:$0xff] %v1264_v21  ;;  %v1288_v27 = vld [vmem:[%s2892_s20 + $0x58] sm:$0xff]  ;;  %v1294_v28 = vld [vmem:[%s2892_s20 + $0x60] sm:$0xff]  ;;  %s3916_s25 = scalar_lea.vmem %s3751_s11, %s2092_s6 [#allocation4]   ;;  %s3919_s27 = scalar_lea.vmem %s3811_s7, %s2092_s6  }
 0x191   : >> { %1271 = vst [vmem:[%s2888_s30 + $0x60] sm:$0xff] %v1270_v22  ;;  %1273 = vst [vmem:[%s2888_s30 + $0x68] sm:$0xff] %v1272_v23  ;;  %v1296_v29 = vld [vmem:[%s2892_s20 + $0x68] sm:$0xff]  ;;  %v1302_v30 = vld [vmem:[%s2892_s20 + $0x70] sm:$0xff] }
 0x192   : >> { %1275 = vst [vmem:[%s2888_s30 + $0x78] sm:$0xff] %v1270_v22  ;;  %1277 = vst [vmem:[%s2888_s30 + $0x80] sm:$0xff] %v1272_v23  ;;  %v1304_v31 = vld [vmem:[%s2892_s20 + $0x78] sm:$0xff]  ;;  %v1310_v32 = vld [vmem:[%s2892_s20 + $0x80] sm:$0xff] }
 0x193   : >> { %1279 = vst [vmem:[%s2888_s30 + $0x88] sm:$0xff] %v1278_v24  ;;  %1283 = vst [vmem:[%s2888_s30 + $0xa0] sm:$0xff] %v1278_v24  ;;  %v1312_v33 = vld [vmem:[%s2892_s20 + $0x88] sm:$0xff]  ;;  %v1318_v34 = vld [vmem:[%s2892_s20 + $0x90] sm:$0xff] }
 0x194   : >> { %1281 = vst [vmem:[%s2888_s30 + $0x90] sm:$0xff] %v1280_v25  ;;  %1285 = vst [vmem:[%s2888_s30 + $0xa8] sm:$0xff] %v1280_v25  ;;  %v1320_v35 = vld [vmem:[%s2892_s20 + $0x98] sm:$0xff]  ;;  %v1326_v36 = vld [vmem:[%s2892_s20 + $0xa0] sm:$0xff] }
 0x195   : >> { %1287 = vst [vmem:[%s2888_s30 + $0xb0] sm:$0xff] %v1286_v26  ;;  %1289 = vst [vmem:[%s2888_s30 + $0xb8] sm:$0xff] %v1288_v27  ;;  %v1328_v37 = vld [vmem:[%s2892_s20 + $0xa8] sm:$0xff]  ;;  %v1334_v38 = vld [vmem:[%s2892_s20 + $0xb0] sm:$0xff] }
 0x196   : >> { %1291 = vst [vmem:[%s2888_s30 + $0xc8] sm:$0xff] %v1286_v26  ;;  %1293 = vst [vmem:[%s2888_s30 + $0xd0] sm:$0xff] %v1288_v27  ;;  %v1336_v39 = vld [vmem:[%s2892_s20 + $0xb8] sm:$0xff]  ;;  %v1342_v40 = vld [vmem:[%s2892_s20 + $0xc0] sm:$0xff] }
 0x197   : >> { %1295 = vst [vmem:[%s2888_s30 + $0xd8] sm:$0xff] %v1294_v28  ;;  %1297 = vst [vmem:[%s2888_s30 + $0xe0] sm:$0xff] %v1296_v29  ;;  %v1344_v41 = vld [vmem:[%s2892_s20 + $0xc8] sm:$0xff]  ;;  %v1350_v42 = vld [vmem:[%s2892_s20 + $0xd0] sm:$0xff] }
 0x198   : >> { %1299 = vst [vmem:[%s2888_s30 + $0xf0] sm:$0xff] %v1294_v28  ;;  %1301 = vst [vmem:[%s2888_s30 + $0xf8] sm:$0xff] %v1296_v29  ;;  %v1352_v43 = vld [vmem:[%s2892_s20 + $0xd8] sm:$0xff]  ;;  %v1358_v44 = vld [vmem:[%s2892_s20 + $0xe0] sm:$0xff] }
 0x199   : >> { %1303 = vst [vmem:[%s2888_s30 + $0x100] sm:$0xff] %v1302_v30  ;;  %1307 = vst [vmem:[%s2888_s30 + $0x118] sm:$0xff] %v1302_v30  ;;  %v1360_v45 = vld [vmem:[%s2892_s20 + $0xe8] sm:$0xff]  ;;  %v1366_v46 = vld [vmem:[%s2892_s20 + $0xf0] sm:$0xff] }
 0x19a   : >> { %1305 = vst [vmem:[%s2888_s30 + $0x108] sm:$0xff] %v1304_v31  ;;  %1309 = vst [vmem:[%s2888_s30 + $0x120] sm:$0xff] %v1304_v31  ;;  %v1368_v47 = vld [vmem:[%s2892_s20 + $0xf8] sm:$0xff]  ;;  %v1374_v48 = vld [vmem:[%s2892_s20 + $0x100] sm:$0xff] }
 0x19b   : >> { %1311 = vst [vmem:[%s2888_s30 + $0x128] sm:$0xff] %v1310_v32  ;;  %1313 = vst [vmem:[%s2888_s30 + $0x130] sm:$0xff] %v1312_v33  ;;  %v1376_v49 = vld [vmem:[%s2892_s20 + $0x108] sm:$0xff]  ;;  %s4471_s20 = smov %s3916_s25 }
 0x19c   : >> { %1315 = vst [vmem:[%s2888_s30 + $0x140] sm:$0xff] %v1310_v32  ;;  %1317 = vst [vmem:[%s2888_s30 + $0x148] sm:$0xff] %v1312_v33 }
 0x19d   : >> { %1319 = vst [vmem:[%s2888_s30 + $0x150] sm:$0xff] %v1318_v34  ;;  %1321 = vst [vmem:[%s2888_s30 + $0x158] sm:$0xff] %v1320_v35 }
 0x19e   : >> { %1323 = vst [vmem:[%s2888_s30 + $0x168] sm:$0xff] %v1318_v34  ;;  %1325 = vst [vmem:[%s2888_s30 + $0x170] sm:$0xff] %v1320_v35 }
 0x19f   : >> { %1327 = vst [vmem:[%s2888_s30 + $0x178] sm:$0xff] %v1326_v36  ;;  %1331 = vst [vmem:[%s2888_s30 + $0x190] sm:$0xff] %v1326_v36 }
 0x1a0   : >> { %1329 = vst [vmem:[%s2888_s30 + $0x180] sm:$0xff] %v1328_v37  ;;  %1333 = vst [vmem:[%s2888_s30 + $0x198] sm:$0xff] %v1328_v37 }
 0x1a1   : >> { %1335 = vst [vmem:[%s2888_s30 + $0x1a0] sm:$0xff] %v1334_v38  ;;  %1337 = vst [vmem:[%s2888_s30 + $0x1a8] sm:$0xff] %v1336_v39 }
 0x1a2   : >> { %1339 = vst [vmem:[%s2888_s30 + $0x1b8] sm:$0xff] %v1334_v38  ;;  %1341 = vst [vmem:[%s2888_s30 + $0x1c0] sm:$0xff] %v1336_v39 }
 0x1a3   : >> { %1343 = vst [vmem:[%s2888_s30 + $0x1c8] sm:$0xff] %v1342_v40  ;;  %1345 = vst [vmem:[%s2888_s30 + $0x1d0] sm:$0xff] %v1344_v41 }
 0x1a4   : >> { %1347 = vst [vmem:[%s2888_s30 + $0x1e0] sm:$0xff] %v1342_v40  ;;  %1349 = vst [vmem:[%s2888_s30 + $0x1e8] sm:$0xff] %v1344_v41 }
 0x1a5   : >> { %1351 = vst [vmem:[%s2888_s30 + $0x1f0] sm:$0xff] %v1350_v42  ;;  %1355 = vst [vmem:[%s2888_s30 + $0x208] sm:$0xff] %v1350_v42  ;;  %1246 = sbr.rel (!%p1243_p4) target bundleno = 395 (0x18b), region = 411 }
 0x1a6   : >> { %1353 = vst [vmem:[%s2888_s30 + $0x1f8] sm:$0xff] %v1352_v43  ;;  %1357 = vst [vmem:[%s2888_s30 + $0x210] sm:$0xff] %v1352_v43 }
 0x1a7   : >> { %1359 = vst [vmem:[%s2888_s30 + $0x218] sm:$0xff] %v1358_v44  ;;  %1361 = vst [vmem:[%s2888_s30 + $0x220] sm:$0xff] %v1360_v45 }
 0x1a8   : >> { %1363 = vst [vmem:[%s2888_s30 + $0x230] sm:$0xff] %v1358_v44  ;;  %1365 = vst [vmem:[%s2888_s30 + $0x238] sm:$0xff] %v1360_v45 }
 0x1a9   : >> { %1367 = vst [vmem:[%s2888_s30 + $0x240] sm:$0xff] %v1366_v46  ;;  %1369 = vst [vmem:[%s2888_s30 + $0x248] sm:$0xff] %v1368_v47 }
 0x1aa   : >> { %1371 = vst [vmem:[%s2888_s30 + $0x258] sm:$0xff] %v1366_v46  ;;  %1373 = vst [vmem:[%s2888_s30 + $0x260] sm:$0xff] %v1368_v47 }
 0x1ab   : >> { %1375 = vst [vmem:[%s2888_s30 + $0x268] sm:$0xff] %v1374_v48  ;;  %1377 = vst [vmem:[%s2888_s30 + $0x270] sm:$0xff] %v1376_v49  ;;  %s4470_s30 = smov %s3919_s27 }
 0x1ac PF: > { %s3979_s29 = sand.u32 3, %s1237_s12   ;;  %s2123_s17 = sshll.u32 %s3824_s28, 9 }
 0x1ad   : > { %s1389_s23 = sshra.s32 %s2123_s17, 4  ;;  %p2097_p0 = scmp.le.s32.totalorder %s3979_s29, 0 }
 0x1ae   : > { %s3983_s9 = scalar_lea.vmem %s3751_s11, %s1389_s23 [#allocation4]   ;;  %s3986_s14 = scalar_lea.vmem %s3811_s7, %s1389_s23  }
 0x1af   : > { %1958 = sbr.rel (%p2097_p0) target bundleno = 448 (0x1c0), region = 416  ;;  %s4473_s22 = smov (!%p2097_p0), %s3986_s14 }
 0x1b0   : > { %s4474_s21 = smov (!%p2097_p0), %s3983_s9  ;;  %s3995_s24 = smov (!%p2097_p0), 0  }
 0x1b1   : > { %s3997_s8 = smov (!%p2097_p0), 0  }
 0x1b6 LB: >> { %v1405_v50 = vld [vmem:[%s2908_s21] sm:$0xff]  ;;  %v1407_v51 = vld [vmem:[%s2908_s21 + $0x10] sm:$0xff]  ;;  %s1437_s4 = sadd.s32 1, %s2912_s24  ;;  %s1399_s8 = sadd.s32 1, %s2916_s8   ;;  %s2916_s8 = sphi %s3997_s8, %s1399_s8   ;;  %s2912_s24 = sphi %s3995_s24, %s4475_s24   ;;  %s2908_s21 = sphi %s4474_s21, %s1442_s21   ;;  %s2904_s22 = sphi %s4473_s22, %s1443_s22  }
 0x1b7   : >> { %v1409_v52 = vld [vmem:[%s2908_s21 + $0x20] sm:$0xff]  ;;  %1406 = vst [vmem:[%s2904_s22] sm:$0xff] %v1405_v50  ;;  %1408 = vst [vmem:[%s2904_s22 + $0x28] sm:$0xff] %v1407_v51  ;;  %v1411_v53 = vld [vmem:[%s2908_s21 + $0x30] sm:$0xff]  ;;  %p1438_p1 = scmp.ge.s32.totalorder %s1437_s4, %s3979_s29  ;;  %p1398_p2 = scmp.ge.s32.totalorder %s1399_s8, %s3979_s29 }
 0x1b8   : >> { %1410 = vst [vmem:[%s2904_s22 + $0x50] sm:$0xff] %v1409_v52  ;;  %v1413_v54 = vld [vmem:[%s2908_s21 + $0x40] sm:$0xff]  ;;  %v1415_v55 = vld [vmem:[%s2908_s21 + $0x50] sm:$0xff]  ;;  %1412 = vst [vmem:[%s2904_s22 + $0x78] sm:$0xff] %v1411_v53 }
 0x1b9   : >> { %1414 = vst [vmem:[%s2904_s22 + $0xa0] sm:$0xff] %v1413_v54  ;;  %1416 = vst [vmem:[%s2904_s22 + $0xc8] sm:$0xff] %v1415_v55  ;;  %v1417_v56 = vld [vmem:[%s2908_s21 + $0x60] sm:$0xff]  ;;  %v1419_v57 = vld [vmem:[%s2908_s21 + $0x70] sm:$0xff]  ;;  %s4513_s4 = smov (%p1438_p1, %s1437_s4), 0  ;;  %1401 = sbr.rel (!%p1398_p2) target bundleno = 438 (0x1b6), region = 422 }
 0x1ba   : >> { %v1421_v58 = vld [vmem:[%s2908_s21 + $0x80] sm:$0xff]  ;;  %1418 = vst [vmem:[%s2904_s22 + $0xf0] sm:$0xff] %v1417_v56  ;;  %1420 = vst [vmem:[%s2904_s22 + $0x118] sm:$0xff] %v1419_v57  ;;  %v1423_v59 = vld [vmem:[%s2908_s21 + $0x90] sm:$0xff]  ;;  %s2098_s12 = sshll.u32 %s4513_s4, 3  ;;  %s4475_s24 = smov %s4513_s4 }
 0x1bb   : >> { %1422 = vst [vmem:[%s2904_s22 + $0x140] sm:$0xff] %v1421_v58  ;;  %v1425_v60 = vld [vmem:[%s2908_s21 + $0xa0] sm:$0xff]  ;;  %v1427_v61 = vld [vmem:[%s2908_s21 + $0xb0] sm:$0xff]  ;;  %1424 = vst [vmem:[%s2904_s22 + $0x168] sm:$0xff] %v1423_v59 }
 0x1bc   : >> { %1426 = vst [vmem:[%s2904_s22 + $0x190] sm:$0xff] %v1425_v60  ;;  %1428 = vst [vmem:[%s2904_s22 + $0x1b8] sm:$0xff] %v1427_v61  ;;  %v1429_v62 = vld [vmem:[%s2908_s21 + $0xc0] sm:$0xff]  ;;  %v1431_v63 = vld [vmem:[%s2908_s21 + $0xd0] sm:$0xff] }
 0x1bd   : >> { %v1433_v0 = vld [vmem:[%s2908_s21 + $0xe0] sm:$0xff]  ;;  %1430 = vst [vmem:[%s2904_s22 + $0x1e0] sm:$0xff] %v1429_v62  ;;  %1432 = vst [vmem:[%s2904_s22 + $0x208] sm:$0xff] %v1431_v63  ;;  %v1435_v1 = vld [vmem:[%s2908_s21 + $0xf0] sm:$0xff]  ;;  %s1442_s21 = scalar_lea.vmem %s3983_s9, %s2098_s12 [#allocation4]  }
 0x1be   : >> { %1434 = vst [vmem:[%s2904_s22 + $0x230] sm:$0xff] %v1433_v0  ;;  %1436 = vst [vmem:[%s2904_s22 + $0x258] sm:$0xff] %v1435_v1  ;;  %s1443_s22 = scalar_lea.vmem %s3986_s14, %s2098_s12  }
 0x1c0 PF: > { %1446 = sbr.rel (%p1233_p5) target bundleno = 533 (0x215), region = 205  ;;  %s1448_s28 = ssub.s32 (!%p1233_p5), %s3813_s3, %s3817_s18 }
 0x1c1   : > { %s1452_s30 = sshrl.u32 (!%p1233_p5), %s3813_s3, 3  ;;  %s4060_s20 = scalar_lea.vmem (!%p1233_p5), %s3751_s11, %s1448_s28 [#allocation4] }
 0x1c2   : > { %s4063_s5 = scalar_lea.vmem (!%p1233_p5), %s3811_s7, %s1448_s28  ;;  %s4067_s15 = sshrl.u32 (!%p1233_p5), %s1452_s30, 2 }
 0x1c3   : > { %p2100_p3 = scmp.le.s32.totalorder (!%p1233_p5), %s4067_s15, 0 }
 0x1c7   : > { %1972 = sbr.rel (%p2100_p3) target bundleno = 495 (0x1ef), region = 427  ;;  %s4476_s19 = smov (!%p2100_p3), %s3811_s7 }
 0x1c8   : > { %s4477_s26 = smov (!%p2100_p3), %s3751_s11  ;;  %s4076_s6 = smov (!%p2100_p3), 0  }
 0x1c9   : > { %s4078_s25 = smov (!%p2100_p3), 0  }
 0x1ce LB: >> { %v1465_v2 = vld [vmem:[%s2924_s26] sm:$0xff]  ;;  %v1467_v3 = vld [vmem:[%s2924_s26 + $0x8] sm:$0xff]  ;;  %v1469_v4 = vld [vmem:[%s2924_s26 + $0x10] sm:$0xff]  ;;  %s1593_s27 = sadd.s32 1, %s2928_s6  ;;  %s1459_s25 = sadd.s32 1, %s2932_s25   ;;  %s2932_s25 = sphi %s4078_s25, %s1459_s25   ;;  %s2928_s6 = sphi %s4076_s6, %s4481_s6   ;;  %s2924_s26 = sphi %s4477_s26, %s4480_s26   ;;  %s2920_s19 = sphi %s4476_s19, %s4479_s19  }
 0x1cf   : >> { %1466 = vst [vmem:[%s2920_s19] sm:$0xff] %v1465_v2  ;;  %1468 = vst [vmem:[%s2920_s19 + $0x8] sm:$0xff] %v1467_v3  ;;  %v1471_v5 = vld [vmem:[%s2924_s26 + $0x18] sm:$0xff]  ;;  %v1477_v6 = vld [vmem:[%s2924_s26 + $0x20] sm:$0xff]  ;;  %p4104_p6 = scmp.ge.s32.totalorder %s1593_s27, %s4067_s15  ;;  %p1458_p7 = scmp.ge.s32.totalorder %s1459_s25, %s4067_s15 }
 0x1d0   : >> { %1470 = vst [vmem:[%s2920_s19 + $0x10] sm:$0xff] %v1469_v4  ;;  %1474 = vst [vmem:[%s2920_s19 + $0x28] sm:$0xff] %v1469_v4  ;;  %v1479_v7 = vld [vmem:[%s2924_s26 + $0x28] sm:$0xff]  ;;  %v1485_v8 = vld [vmem:[%s2924_s26 + $0x30] sm:$0xff] }
 0x1d1   : >> { %1472 = vst [vmem:[%s2920_s19 + $0x18] sm:$0xff] %v1471_v5  ;;  %1476 = vst [vmem:[%s2920_s19 + $0x30] sm:$0xff] %v1471_v5  ;;  %v1487_v9 = vld [vmem:[%s2924_s26 + $0x38] sm:$0xff]  ;;  %v1493_v10 = vld [vmem:[%s2924_s26 + $0x40] sm:$0xff]  ;;  %s4515_s27 = smov (%p4104_p6, %s1593_s27), 0 }
 0x1d2   : >> { %1478 = vst [vmem:[%s2920_s19 + $0x38] sm:$0xff] %v1477_v6  ;;  %1480 = vst [vmem:[%s2920_s19 + $0x40] sm:$0xff] %v1479_v7  ;;  %v1495_v11 = vld [vmem:[%s2924_s26 + $0x48] sm:$0xff]  ;;  %v1501_v12 = vld [vmem:[%s2924_s26 + $0x50] sm:$0xff]  ;;  %s2101_s17 = sshll.u32 %s4515_s27, 5  ;;  %s4481_s6 = smov %s4515_s27 }
 0x1d3   : >> { %1482 = vst [vmem:[%s2920_s19 + $0x50] sm:$0xff] %v1477_v6  ;;  %1484 = vst [vmem:[%s2920_s19 + $0x58] sm:$0xff] %v1479_v7  ;;  %v1503_v13 = vld [vmem:[%s2924_s26 + $0x58] sm:$0xff]  ;;  %v1509_v14 = vld [vmem:[%s2924_s26 + $0x60] sm:$0xff]  ;;  %s4159_s23 = scalar_lea.vmem %s3751_s11, %s2101_s17 [#allocation4]   ;;  %s4162_s9 = scalar_lea.vmem %s3811_s7, %s2101_s17  }
 0x1d4   : >> { %1486 = vst [vmem:[%s2920_s19 + $0x60] sm:$0xff] %v1485_v8  ;;  %1488 = vst [vmem:[%s2920_s19 + $0x68] sm:$0xff] %v1487_v9  ;;  %v1511_v15 = vld [vmem:[%s2924_s26 + $0x68] sm:$0xff]  ;;  %v1517_v16 = vld [vmem:[%s2924_s26 + $0x70] sm:$0xff] }
 0x1d5   : >> { %1490 = vst [vmem:[%s2920_s19 + $0x78] sm:$0xff] %v1485_v8  ;;  %1492 = vst [vmem:[%s2920_s19 + $0x80] sm:$0xff] %v1487_v9  ;;  %v1519_v17 = vld [vmem:[%s2924_s26 + $0x78] sm:$0xff]  ;;  %v1525_v18 = vld [vmem:[%s2924_s26 + $0x80] sm:$0xff] }
 0x1d6   : >> { %1494 = vst [vmem:[%s2920_s19 + $0x88] sm:$0xff] %v1493_v10  ;;  %1498 = vst [vmem:[%s2920_s19 + $0xa0] sm:$0xff] %v1493_v10  ;;  %v1527_v19 = vld [vmem:[%s2924_s26 + $0x88] sm:$0xff]  ;;  %v1533_v20 = vld [vmem:[%s2924_s26 + $0x90] sm:$0xff] }
 0x1d7   : >> { %1496 = vst [vmem:[%s2920_s19 + $0x90] sm:$0xff] %v1495_v11  ;;  %1500 = vst [vmem:[%s2920_s19 + $0xa8] sm:$0xff] %v1495_v11  ;;  %v1535_v21 = vld [vmem:[%s2924_s26 + $0x98] sm:$0xff]  ;;  %v1541_v22 = vld [vmem:[%s2924_s26 + $0xa0] sm:$0xff] }
 0x1d8   : >> { %1502 = vst [vmem:[%s2920_s19 + $0xb0] sm:$0xff] %v1501_v12  ;;  %1504 = vst [vmem:[%s2920_s19 + $0xb8] sm:$0xff] %v1503_v13  ;;  %v1543_v23 = vld [vmem:[%s2924_s26 + $0xa8] sm:$0xff]  ;;  %v1549_v24 = vld [vmem:[%s2924_s26 + $0xb0] sm:$0xff] }
 0x1d9   : >> { %1506 = vst [vmem:[%s2920_s19 + $0xc8] sm:$0xff] %v1501_v12  ;;  %1508 = vst [vmem:[%s2920_s19 + $0xd0] sm:$0xff] %v1503_v13  ;;  %v1551_v25 = vld [vmem:[%s2924_s26 + $0xb8] sm:$0xff]  ;;  %v1557_v26 = vld [vmem:[%s2924_s26 + $0xc0] sm:$0xff] }
 0x1da   : >> { %1510 = vst [vmem:[%s2920_s19 + $0xd8] sm:$0xff] %v1509_v14  ;;  %1512 = vst [vmem:[%s2920_s19 + $0xe0] sm:$0xff] %v1511_v15  ;;  %v1559_v27 = vld [vmem:[%s2924_s26 + $0xc8] sm:$0xff]  ;;  %v1565_v28 = vld [vmem:[%s2924_s26 + $0xd0] sm:$0xff] }
 0x1db   : >> { %1514 = vst [vmem:[%s2920_s19 + $0xf0] sm:$0xff] %v1509_v14  ;;  %1516 = vst [vmem:[%s2920_s19 + $0xf8] sm:$0xff] %v1511_v15  ;;  %v1567_v29 = vld [vmem:[%s2924_s26 + $0xd8] sm:$0xff]  ;;  %v1573_v30 = vld [vmem:[%s2924_s26 + $0xe0] sm:$0xff] }
 0x1dc   : >> { %1518 = vst [vmem:[%s2920_s19 + $0x100] sm:$0xff] %v1517_v16  ;;  %1522 = vst [vmem:[%s2920_s19 + $0x118] sm:$0xff] %v1517_v16  ;;  %v1575_v31 = vld [vmem:[%s2924_s26 + $0xe8] sm:$0xff]  ;;  %v1581_v32 = vld [vmem:[%s2924_s26 + $0xf0] sm:$0xff] }
 0x1dd   : >> { %1520 = vst [vmem:[%s2920_s19 + $0x108] sm:$0xff] %v1519_v17  ;;  %1524 = vst [vmem:[%s2920_s19 + $0x120] sm:$0xff] %v1519_v17  ;;  %v1583_v33 = vld [vmem:[%s2924_s26 + $0xf8] sm:$0xff]  ;;  %v1589_v34 = vld [vmem:[%s2924_s26 + $0x100] sm:$0xff] }
 0x1de   : >> { %1526 = vst [vmem:[%s2920_s19 + $0x128] sm:$0xff] %v1525_v18  ;;  %1528 = vst [vmem:[%s2920_s19 + $0x130] sm:$0xff] %v1527_v19  ;;  %v1591_v35 = vld [vmem:[%s2924_s26 + $0x108] sm:$0xff]  ;;  %s4480_s26 = smov %s4159_s23 }
 0x1df   : >> { %1530 = vst [vmem:[%s2920_s19 + $0x140] sm:$0xff] %v1525_v18  ;;  %1532 = vst [vmem:[%s2920_s19 + $0x148] sm:$0xff] %v1527_v19 }
 0x1e0   : >> { %1534 = vst [vmem:[%s2920_s19 + $0x150] sm:$0xff] %v1533_v20  ;;  %1536 = vst [vmem:[%s2920_s19 + $0x158] sm:$0xff] %v1535_v21 }
 0x1e1   : >> { %1538 = vst [vmem:[%s2920_s19 + $0x168] sm:$0xff] %v1533_v20  ;;  %1540 = vst [vmem:[%s2920_s19 + $0x170] sm:$0xff] %v1535_v21 }
 0x1e2   : >> { %1542 = vst [vmem:[%s2920_s19 + $0x178] sm:$0xff] %v1541_v22  ;;  %1546 = vst [vmem:[%s2920_s19 + $0x190] sm:$0xff] %v1541_v22 }
 0x1e3   : >> { %1544 = vst [vmem:[%s2920_s19 + $0x180] sm:$0xff] %v1543_v23  ;;  %1548 = vst [vmem:[%s2920_s19 + $0x198] sm:$0xff] %v1543_v23 }
 0x1e4   : >> { %1550 = vst [vmem:[%s2920_s19 + $0x1a0] sm:$0xff] %v1549_v24  ;;  %1552 = vst [vmem:[%s2920_s19 + $0x1a8] sm:$0xff] %v1551_v25 }
 0x1e5   : >> { %1554 = vst [vmem:[%s2920_s19 + $0x1b8] sm:$0xff] %v1549_v24  ;;  %1556 = vst [vmem:[%s2920_s19 + $0x1c0] sm:$0xff] %v1551_v25 }
 0x1e6   : >> { %1558 = vst [vmem:[%s2920_s19 + $0x1c8] sm:$0xff] %v1557_v26  ;;  %1560 = vst [vmem:[%s2920_s19 + $0x1d0] sm:$0xff] %v1559_v27 }
 0x1e7   : >> { %1562 = vst [vmem:[%s2920_s19 + $0x1e0] sm:$0xff] %v1557_v26  ;;  %1564 = vst [vmem:[%s2920_s19 + $0x1e8] sm:$0xff] %v1559_v27 }
 0x1e8   : >> { %1566 = vst [vmem:[%s2920_s19 + $0x1f0] sm:$0xff] %v1565_v28  ;;  %1570 = vst [vmem:[%s2920_s19 + $0x208] sm:$0xff] %v1565_v28  ;;  %1461 = sbr.rel (!%p1458_p7) target bundleno = 462 (0x1ce), region = 433 }
 0x1e9   : >> { %1568 = vst [vmem:[%s2920_s19 + $0x1f8] sm:$0xff] %v1567_v29  ;;  %1572 = vst [vmem:[%s2920_s19 + $0x210] sm:$0xff] %v1567_v29 }
 0x1ea   : >> { %1574 = vst [vmem:[%s2920_s19 + $0x218] sm:$0xff] %v1573_v30  ;;  %1576 = vst [vmem:[%s2920_s19 + $0x220] sm:$0xff] %v1575_v31 }
 0x1eb   : >> { %1578 = vst [vmem:[%s2920_s19 + $0x230] sm:$0xff] %v1573_v30  ;;  %1580 = vst [vmem:[%s2920_s19 + $0x238] sm:$0xff] %v1575_v31 }
 0x1ec   : >> { %1582 = vst [vmem:[%s2920_s19 + $0x240] sm:$0xff] %v1581_v32  ;;  %1584 = vst [vmem:[%s2920_s19 + $0x248] sm:$0xff] %v1583_v33 }
 0x1ed   : >> { %1586 = vst [vmem:[%s2920_s19 + $0x258] sm:$0xff] %v1581_v32  ;;  %1588 = vst [vmem:[%s2920_s19 + $0x260] sm:$0xff] %v1583_v33 }
 0x1ee   : >> { %1590 = vst [vmem:[%s2920_s19 + $0x268] sm:$0xff] %v1589_v34  ;;  %1592 = vst [vmem:[%s2920_s19 + $0x270] sm:$0xff] %v1591_v35  ;;  %s4479_s19 = smov %s4162_s9 }
 0x1ef PF: > { %s4222_s14 = sand.u32 3, %s1452_s30   ;;  %s2125_s22 = sshll.u32 %s4067_s15, 9 }
 0x1f0   : > { %s1604_s21 = sshra.s32 %s2125_s22, 4  ;;  %p2106_p8 = scmp.le.s32.totalorder %s4222_s14, 0 }
 0x1f1   : > { %s4226_s24 = scalar_lea.vmem %s3751_s11, %s1604_s21 [#allocation4]   ;;  %s4229_s8 = scalar_lea.vmem %s3811_s7, %s1604_s21  }
 0x1f2   : > { %1986 = sbr.rel (%p2106_p8) target bundleno = 515 (0x203), region = 438  ;;  %s4482_s4 = smov (!%p2106_p8), %s4229_s8 }
 0x1f3   : > { %s4483_s12 = smov (!%p2106_p8), %s4226_s24  ;;  %s4238_s28 = smov (!%p2106_p8), 0  }
 0x1f4   : > { %s4240_s19 = smov (!%p2106_p8), 0  }
 0x1f9 LB: >> { %v1620_v36 = vld [vmem:[%s2940_s12] sm:$0xff]  ;;  %v1622_v37 = vld [vmem:[%s2940_s12 + $0x10] sm:$0xff]  ;;  %s1652_s30 = sadd.s32 1, %s2944_s28  ;;  %s1614_s19 = sadd.s32 1, %s2948_s19   ;;  %s2948_s19 = sphi %s4240_s19, %s1614_s19   ;;  %s2944_s28 = sphi %s4238_s28, %s4484_s28   ;;  %s2940_s12 = sphi %s4483_s12, %s1657_s12   ;;  %s2936_s4 = sphi %s4482_s4, %s1658_s4  }
 0x1fa   : >> { %v1624_v38 = vld [vmem:[%s2940_s12 + $0x20] sm:$0xff]  ;;  %1621 = vst [vmem:[%s2936_s4] sm:$0xff] %v1620_v36  ;;  %1623 = vst [vmem:[%s2936_s4 + $0x28] sm:$0xff] %v1622_v37  ;;  %v1626_v39 = vld [vmem:[%s2940_s12 + $0x30] sm:$0xff]  ;;  %p1653_p9 = scmp.ge.s32.totalorder %s1652_s30, %s4222_s14  ;;  %p1613_p10 = scmp.ge.s32.totalorder %s1614_s19, %s4222_s14 }
 0x1fb   : >> { %1625 = vst [vmem:[%s2936_s4 + $0x50] sm:$0xff] %v1624_v38  ;;  %v1628_v40 = vld [vmem:[%s2940_s12 + $0x40] sm:$0xff]  ;;  %v1630_v41 = vld [vmem:[%s2940_s12 + $0x50] sm:$0xff]  ;;  %1627 = vst [vmem:[%s2936_s4 + $0x78] sm:$0xff] %v1626_v39 }
 0x1fc   : >> { %1629 = vst [vmem:[%s2936_s4 + $0xa0] sm:$0xff] %v1628_v40  ;;  %1631 = vst [vmem:[%s2936_s4 + $0xc8] sm:$0xff] %v1630_v41  ;;  %v1632_v42 = vld [vmem:[%s2940_s12 + $0x60] sm:$0xff]  ;;  %v1634_v43 = vld [vmem:[%s2940_s12 + $0x70] sm:$0xff]  ;;  %s4517_s30 = smov (%p1653_p9, %s1652_s30), 0  ;;  %1616 = sbr.rel (!%p1613_p10) target bundleno = 505 (0x1f9), region = 444 }
 0x1fd   : >> { %v1636_v44 = vld [vmem:[%s2940_s12 + $0x80] sm:$0xff]  ;;  %1633 = vst [vmem:[%s2936_s4 + $0xf0] sm:$0xff] %v1632_v42  ;;  %1635 = vst [vmem:[%s2936_s4 + $0x118] sm:$0xff] %v1634_v43  ;;  %v1638_v45 = vld [vmem:[%s2940_s12 + $0x90] sm:$0xff]  ;;  %s2107_s15 = sshll.u32 %s4517_s30, 3  ;;  %s4484_s28 = smov %s4517_s30 }
 0x1fe   : >> { %1637 = vst [vmem:[%s2936_s4 + $0x140] sm:$0xff] %v1636_v44  ;;  %v1640_v46 = vld [vmem:[%s2940_s12 + $0xa0] sm:$0xff]  ;;  %v1642_v47 = vld [vmem:[%s2940_s12 + $0xb0] sm:$0xff]  ;;  %1639 = vst [vmem:[%s2936_s4 + $0x168] sm:$0xff] %v1638_v45 }
 0x1ff   : >> { %1641 = vst [vmem:[%s2936_s4 + $0x190] sm:$0xff] %v1640_v46  ;;  %1643 = vst [vmem:[%s2936_s4 + $0x1b8] sm:$0xff] %v1642_v47  ;;  %v1644_v48 = vld [vmem:[%s2940_s12 + $0xc0] sm:$0xff]  ;;  %v1646_v49 = vld [vmem:[%s2940_s12 + $0xd0] sm:$0xff] }
 0x200   : >> { %v1648_v50 = vld [vmem:[%s2940_s12 + $0xe0] sm:$0xff]  ;;  %1645 = vst [vmem:[%s2936_s4 + $0x1e0] sm:$0xff] %v1644_v48  ;;  %1647 = vst [vmem:[%s2936_s4 + $0x208] sm:$0xff] %v1646_v49  ;;  %v1650_v51 = vld [vmem:[%s2940_s12 + $0xf0] sm:$0xff]  ;;  %s1657_s12 = scalar_lea.vmem %s4226_s24, %s2107_s15 [#allocation4]  }
 0x201   : >> { %1649 = vst [vmem:[%s2936_s4 + $0x230] sm:$0xff] %v1648_v50  ;;  %1651 = vst [vmem:[%s2936_s4 + $0x258] sm:$0xff] %v1650_v51  ;;  %s1658_s4 = scalar_lea.vmem %s4229_s8, %s2107_s15  }
 0x203 PF: > { %s2955_s26 = smov 0  }
 0x204   : > { %s4298_s6 = sshllo.u32 %s2955_s26, %s3817_s18 }
 0x205   : > { %v1668_v52 = vld [vmem:[%s4060_s20] sm:%s4298_s6]  ;;  %v1670_v53 = vld [vmem:[%s4060_s20 + $0x10] sm:%s4298_s6] }
 0x206   : > { %1669 = vst [vmem:[%s4063_s5] sm:%s4298_s6] %v1668_v52  ;;  %1671 = vst [vmem:[%s4063_s5 + $0x28] sm:%s4298_s6] %v1670_v53 }
 0x207   : > { %v1672_v54 = vld [vmem:[%s4060_s20 + $0x20] sm:%s4298_s6]  ;;  %v1674_v55 = vld [vmem:[%s4060_s20 + $0x30] sm:%s4298_s6] }
 0x208   : > { %1673 = vst [vmem:[%s4063_s5 + $0x50] sm:%s4298_s6] %v1672_v54  ;;  %1675 = vst [vmem:[%s4063_s5 + $0x78] sm:%s4298_s6] %v1674_v55 }
 0x209   : > { %v1676_v56 = vld [vmem:[%s4060_s20 + $0x40] sm:%s4298_s6]  ;;  %v1678_v57 = vld [vmem:[%s4060_s20 + $0x50] sm:%s4298_s6] }
 0x20a   : > { %1677 = vst [vmem:[%s4063_s5 + $0xa0] sm:%s4298_s6] %v1676_v56  ;;  %1679 = vst [vmem:[%s4063_s5 + $0xc8] sm:%s4298_s6] %v1678_v57 }
 0x20b   : > { %v1680_v58 = vld [vmem:[%s4060_s20 + $0x60] sm:%s4298_s6]  ;;  %v1682_v59 = vld [vmem:[%s4060_s20 + $0x70] sm:%s4298_s6] }
 0x20c   : > { %1681 = vst [vmem:[%s4063_s5 + $0xf0] sm:%s4298_s6] %v1680_v58  ;;  %1683 = vst [vmem:[%s4063_s5 + $0x118] sm:%s4298_s6] %v1682_v59 }
 0x20d   : > { %v1684_v60 = vld [vmem:[%s4060_s20 + $0x80] sm:%s4298_s6]  ;;  %v1686_v61 = vld [vmem:[%s4060_s20 + $0x90] sm:%s4298_s6] }
 0x20e   : > { %1685 = vst [vmem:[%s4063_s5 + $0x140] sm:%s4298_s6] %v1684_v60  ;;  %1687 = vst [vmem:[%s4063_s5 + $0x168] sm:%s4298_s6] %v1686_v61 }
 0x20f   : > { %v1688_v62 = vld [vmem:[%s4060_s20 + $0xa0] sm:%s4298_s6]  ;;  %v1690_v63 = vld [vmem:[%s4060_s20 + $0xb0] sm:%s4298_s6] }
 0x210   : > { %1689 = vst [vmem:[%s4063_s5 + $0x190] sm:%s4298_s6] %v1688_v62  ;;  %1691 = vst [vmem:[%s4063_s5 + $0x1b8] sm:%s4298_s6] %v1690_v63 }
 0x211   : > { %v1692_v0 = vld [vmem:[%s4060_s20 + $0xc0] sm:%s4298_s6]  ;;  %v1694_v1 = vld [vmem:[%s4060_s20 + $0xd0] sm:%s4298_s6] }
 0x212   : > { %1693 = vst [vmem:[%s4063_s5 + $0x1e0] sm:%s4298_s6] %v1692_v0  ;;  %1695 = vst [vmem:[%s4063_s5 + $0x208] sm:%s4298_s6] %v1694_v1 }
 0x213   : > { %v1696_v2 = vld [vmem:[%s4060_s20 + $0xe0] sm:%s4298_s6]  ;;  %v1698_v3 = vld [vmem:[%s4060_s20 + $0xf0] sm:%s4298_s6] }
 0x214   : > { %1697 = vst [vmem:[%s4063_s5 + $0x230] sm:%s4298_s6] %v1696_v2  ;;  %1699 = vst [vmem:[%s4063_s5 + $0x258] sm:%s4298_s6] %v1698_v3 }
 0x215 PF: > { %p2109_p5 = scmp.ge.u32.totalorder %s3813_s3, 8 }
 0x216   : > { %s2956_s18 = smov (!%p2109_p5), 0  }
 0x217   : > { %1190 = sbr.rel (%p2109_p5) target bundleno = 552 (0x228), region = 176  ;;  %s4366_s20 = sshllo.u32 (!%p2109_p5), %s2956_s18, %s3813_s3 }
 0x218   : > { %v1200_v4 = vld [vmem:[%s3751_s11] sm:%s4366_s20] (!%p2109_p5)  ;;  %v1202_v5 = vld [vmem:[%s3751_s11 + $0x10] sm:%s4366_s20] (!%p2109_p5) }
 0x219   : > { %1201 = vst [vmem:[%s3811_s7] sm:%s4366_s20] (!%p2109_p5), %v1200_v4  ;;  %1203 = vst [vmem:[%s3811_s7 + $0x28] sm:%s4366_s20] (!%p2109_p5), %v1202_v5 }
 0x21a   : > { %v1204_v6 = vld [vmem:[%s3751_s11 + $0x20] sm:%s4366_s20] (!%p2109_p5)  ;;  %v1206_v7 = vld [vmem:[%s3751_s11 + $0x30] sm:%s4366_s20] (!%p2109_p5) }
 0x21b   : > { %1205 = vst [vmem:[%s3811_s7 + $0x50] sm:%s4366_s20] (!%p2109_p5), %v1204_v6  ;;  %1207 = vst [vmem:[%s3811_s7 + $0x78] sm:%s4366_s20] (!%p2109_p5), %v1206_v7 }
 0x21c   : > { %v1208_v8 = vld [vmem:[%s3751_s11 + $0x40] sm:%s4366_s20] (!%p2109_p5)  ;;  %v1210_v9 = vld [vmem:[%s3751_s11 + $0x50] sm:%s4366_s20] (!%p2109_p5) }
 0x21d   : > { %1209 = vst [vmem:[%s3811_s7 + $0xa0] sm:%s4366_s20] (!%p2109_p5), %v1208_v8  ;;  %1211 = vst [vmem:[%s3811_s7 + $0xc8] sm:%s4366_s20] (!%p2109_p5), %v1210_v9 }
 0x21e   : > { %v1212_v10 = vld [vmem:[%s3751_s11 + $0x60] sm:%s4366_s20]  ;;  %v1214_v11 = vld [vmem:[%s3751_s11 + $0x70] sm:%s4366_s20] }
 0x21f   : > { %1213 = vst [vmem:[%s3811_s7 + $0xf0] sm:%s4366_s20] %v1212_v10  ;;  %1215 = vst [vmem:[%s3811_s7 + $0x118] sm:%s4366_s20] %v1214_v11 }
 0x220   : > { %v1216_v12 = vld [vmem:[%s3751_s11 + $0x80] sm:%s4366_s20]  ;;  %v1218_v13 = vld [vmem:[%s3751_s11 + $0x90] sm:%s4366_s20] }
 0x221   : > { %1217 = vst [vmem:[%s3811_s7 + $0x140] sm:%s4366_s20] %v1216_v12  ;;  %1219 = vst [vmem:[%s3811_s7 + $0x168] sm:%s4366_s20] %v1218_v13 }
 0x222   : > { %v1220_v14 = vld [vmem:[%s3751_s11 + $0xa0] sm:%s4366_s20]  ;;  %v1222_v15 = vld [vmem:[%s3751_s11 + $0xb0] sm:%s4366_s20] }
 0x223   : > { %1221 = vst [vmem:[%s3811_s7 + $0x190] sm:%s4366_s20] %v1220_v14  ;;  %1223 = vst [vmem:[%s3811_s7 + $0x1b8] sm:%s4366_s20] %v1222_v15 }
 0x224   : > { %v1224_v16 = vld [vmem:[%s3751_s11 + $0xc0] sm:%s4366_s20]  ;;  %v1226_v17 = vld [vmem:[%s3751_s11 + $0xd0] sm:%s4366_s20] }
 0x225   : > { %1225 = vst [vmem:[%s3811_s7 + $0x1e0] sm:%s4366_s20] %v1224_v16  ;;  %1227 = vst [vmem:[%s3811_s7 + $0x208] sm:%s4366_s20] %v1226_v17 }
 0x226   : > { %v1228_v18 = vld [vmem:[%s3751_s11 + $0xe0] sm:%s4366_s20]  ;;  %v1230_v19 = vld [vmem:[%s3751_s11 + $0xf0] sm:%s4366_s20] }
 0x227   : > { %1229 = vst [vmem:[%s3811_s7 + $0x230] sm:%s4366_s20] %v1228_v18  ;;  %1231 = vst [vmem:[%s3811_s7 + $0x258] sm:%s4366_s20] %v1230_v19 }
 0x228 PF: > { %p9_p11 = scmp.ge.s32.totalorder %s2991_s13, 5   ;;  %s4485_s9 = smov %s2752_s10 }
 0x229   : > { %s4486_s10 = smov %s3001_s16  ;;  %s4487_s11 = smov %s2991_s13 }
 0x22a   :  { %11 = sbr.rel (!%p9_p11) target bundleno = 2 (0x2), region = 455 }

</bundles_post_ra>
